<compile_context>
chip_gen: v7x
topology: tpu7x:2x2x1
jax: 0.10.0
libtpu: 0.0.40
codegen_flags: <defaults>
</compile_context>

<pallas_src>
import functools

import jax
import jax.numpy as jnp
from jax.experimental import pallas as pl
from jax.experimental.pallas import tpu as pltpu


def _conv_stats_kernel(x_ref, w_ref, conv_ref, stats_ref, *,
                       kh_sz, kw_sz, h_out, w_out):
    """Per-image conv (KH*KW shifted matmuls) + per-channel sum / sumsq.

    x_ref     : (H_pad, W_pad, C_in)       f32  padded NHWC slab of one image
    w_ref     : (KH*KW, C_in, C_out_pad)   bf16 folded conv weights (resident)
    conv_ref  : (H_out*W_out, C_out_pad)   f32  pre-BN conv rows for this image
    stats_ref : (1, 8, C_out_pad)          f32  row 0 = sum, row 1 = sum of squares
    """
    hw = h_out * w_out
    conv_ref[...] = jnp.zeros_like(conv_ref)
    for kh in range(kh_sz):
        for kw in range(kw_sz):
            win = x_ref[pl.ds(kh, h_out), pl.ds(kw, w_out), :]   # (H_out, W_out, C_in)
            lhs = win.reshape(hw, win.shape[-1]).astype(jnp.bfloat16)
            rhs = w_ref[kh * kw_sz + kw, :, :]                   # (C_in, C_out_pad)
            conv_ref[...] += jnp.dot(lhs, rhs,
                                     preferred_element_type=jnp.float32)

    acc = conv_ref[...]
    s = jnp.sum(acc, axis=0, keepdims=True)          # (1, C_out_pad)
    ss = jnp.sum(acc * acc, axis=0, keepdims=True)   # (1, C_out_pad)
    pad_rows = stats_ref.shape[1] - 2
    stats_ref[0, :, :] = jnp.concatenate(
        [s, ss, jnp.zeros((pad_rows, s.shape[-1]), jnp.float32)], axis=0)


def _bn_relu_kernel(conv_ref, scale_ref, shift_ref, o_ref):
    """Fused affine normalize (scale*x + shift) + ReLU over one row tile."""
    y = conv_ref[...] * scale_ref[...] + shift_ref[...]
    o_ref[...] = jnp.maximum(y, 0.0).astype(o_ref.dtype)


def _pick_row_tile(m):
    for t in (1024, 512, 256, 128, 64, 32, 16, 8):
        if m % t == 0 and m // t >= 2:
            return t
    return m


def conv_module_forward(x_nchw, w_oihw, bias, gamma, beta,
                        *, stride=1, padding=1, eps=1e-5):
    # `bias` is accepted for parity with nn.Conv2d(bias=True) but is unused:
    # a per-channel constant cancels exactly under training-mode BatchNorm.
    del bias
    assert stride == 1, "synthetic module uses stride=1"
    n, c_in, h, w = x_nchw.shape
    c_out, c_in_w, kh_sz, kw_sz = w_oihw.shape
    assert c_in == c_in_w

    h_pad, w_pad = h + 2 * padding, w + 2 * padding
    h_out, w_out = h_pad - kh_sz + 1, w_pad - kw_sz + 1
    hw = h_out * w_out
    m = n * hw
    c_out_pad = ((c_out + 127) // 128) * 128          # lane-dense channel dim

    # --- glue (cheap, fused by XLA under jit): NCHW -> padded NHWC, fold weights ---
    x = jnp.transpose(x_nchw, (0, 2, 3, 1)).astype(jnp.float32)
    x = jnp.pad(x, ((0, 0), (padding, padding), (padding, padding), (0, 0)))
    x = x.reshape(n * h_pad, w_pad, c_in)

    w_k = jnp.transpose(w_oihw, (2, 3, 1, 0)).reshape(kh_sz * kw_sz, c_in, c_out)
    w_k = jnp.pad(w_k, ((0, 0), (0, 0), (0, c_out_pad - c_out))).astype(jnp.bfloat16)

    kernel_a = functools.partial(_conv_stats_kernel, kh_sz=kh_sz, kw_sz=kw_sz,
                                 h_out=h_out, w_out=w_out)

    # --- pass 1: conv + per-image channel stats, grid over batch (megacore) ---
    conv2d, stats = pl.pallas_call(
        kernel_a,
        out_shape=(
            jax.ShapeDtypeStruct((m, c_out_pad), jnp.float32),      # pre-BN conv rows
            jax.ShapeDtypeStruct((n, 8, c_out_pad), jnp.float32),   # per-image stats
        ),
        grid=(n,),
        in_specs=[
            pl.BlockSpec((h_pad, w_pad, c_in), lambda i: (i, 0, 0)),
            pl.BlockSpec((kh_sz * kw_sz, c_in, c_out_pad), lambda i: (0, 0, 0)),
        ],
        out_specs=(
            pl.BlockSpec((hw, c_out_pad), lambda i: (i, 0)),
            pl.BlockSpec((1, 8, c_out_pad), lambda i: (i, 0, 0)),
        ),
        compiler_params=pltpu.CompilerParams(
            dimension_semantics=("parallel",)),
    )(x, w_k)

    # --- tiny (C,) combine: global mean/var -> one fused scale/shift per channel ---
    cnt = float(m)
    ch_sum = jnp.sum(stats[:, 0, :], axis=0)
    ch_ssq = jnp.sum(stats[:, 1, :], axis=0)
    mean = ch_sum / cnt
    var = jnp.maximum(ch_ssq / cnt - mean * mean, 0.0)  # biased var (PyTorch train norm)
    gamma_p = jnp.pad(gamma.astype(jnp.float32), (0, c_out_pad - c_out))
    beta_p = jnp.pad(beta.astype(jnp.float32), (0, c_out_pad - c_out))
    scale = gamma_p * jax.lax.rsqrt(var + eps)
    shift = beta_p - mean * scale

    # --- pass 2: normalize + ReLU, tiled over rows (parallel -> megacore) ---
    tm = _pick_row_tile(m)
    out2d = pl.pallas_call(
        _bn_relu_kernel,
        out_shape=jax.ShapeDtypeStruct((m, c_out_pad), jnp.float32),
        grid=(m // tm,),
        in_specs=[
            pl.BlockSpec((tm, c_out_pad), lambda i: (i, 0)),
            pl.BlockSpec((1, c_out_pad), lambda i: (0, 0)),
            pl.BlockSpec((1, c_out_pad), lambda i: (0, 0)),
        ],
        out_specs=pl.BlockSpec((tm, c_out_pad), lambda i: (i, 0)),
        compiler_params=pltpu.CompilerParams(
            dimension_semantics=("parallel",)),
    )(conv2d, scale.reshape(1, c_out_pad), shift.reshape(1, c_out_pad))

    # glue: strip channel padding, back to NCHW
    out = out2d.reshape(n, h_out, w_out, c_out_pad)[:, :, :, :c_out]
    return jnp.transpose(out, (0, 3, 1, 2))


def _reference(x_nchw, w_oihw, bias, gamma, beta, *, padding=1, eps=1e-5):
    y = jax.lax.conv_general_dilated(
        x_nchw, w_oihw, window_strides=(1, 1),
        padding=((padding, padding), (padding, padding)),
        dimension_numbers=("NCHW", "OIHW", "NCHW"),
        precision=jax.lax.Precision.HIGHEST)
    y = y + bias[None, :, None, None]
    mean = jnp.mean(y, axis=(0, 2, 3), keepdims=True)
    var = jnp.mean((y - mean) ** 2, axis=(0, 2, 3), keepdims=True)
    y = (y - mean) * jax.lax.rsqrt(var + eps)
    y = y * gamma[None, :, None, None] + beta[None, :, None, None]
    return jnp.maximum(y, 0.0)


if __name__ == "__main__":
    # small shapes: batch=2, inplanes=4, planes=8, spatial=16, 3x3 conv, pad=1
    N, C_IN, C_OUT, H, W, KH, KW = 2, 4, 8, 16, 16, 3, 3

    key = jax.random.PRNGKey(0)
    kx, kw_, kb, kg, kbeta = jax.random.split(key, 5)

    # bf16-representable inputs so the bf16-MXU kernel and the f32 reference
    # agree tightly (bf16*bf16 products are exact in the f32 accumulator).
    x = jax.random.normal(kx, (N, C_IN, H, W), dtype=jnp.float32)
    x = x.astype(jnp.bfloat16).astype(jnp.float32)
    w = jax.random.normal(kw_, (C_OUT, C_IN, KH, KW), dtype=jnp.float32) * 0.1
    w = w.astype(jnp.bfloat16).astype(jnp.float32)
    b = jax.random.normal(kb, (C_OUT,), dtype=jnp.float32) * 0.1
    gamma = 1.0 + 0.1 * jax.random.normal(kg, (C_OUT,), dtype=jnp.float32)
    beta = 0.1 * jax.random.normal(kbeta, (C_OUT,), dtype=jnp.float32)

    fwd = jax.jit(conv_module_forward)
    out = fwd(x, w, b, gamma, beta)
    out = jax.block_until_ready(out)

    ref = _reference(x, w, b, gamma, beta, padding=1)
    assert out.shape == (N, C_OUT, H, W)
    max_err = float(jnp.max(jnp.abs(out - ref)))
    assert jnp.allclose(out, ref, atol=5e-3, rtol=5e-3), max_err

    print("KERNEL_OK")
</pallas_src>

<mosaic_0001>
module attributes {stable_mosaic.version = 11 : i64} {
  func.func @_bn_relu_kernel(%arg0: i32, %arg1: memref<256x128xf32, #tpu.memory_space<vmem>>, %arg2: memref<1x128xf32, #tpu.memory_space<vmem>>, %arg3: memref<1x128xf32, #tpu.memory_space<vmem>>, %arg4: memref<256x128xf32, #tpu.memory_space<vmem>>) attributes {dimension_semantics = [#tpu.dimension_semantics<parallel>], iteration_bounds = array<i64: 2>, scalar_prefetch = 0 : i64, scratch_operands = 0 : i64, tpu.core_type = #tpu.core_type<tc>, window_params = [{transform_indices = @transform_0, window_bounds = array<i64: 256, 128>}, {pipeline_mode = #tpu.pipeline_mode<synchronous>, transform_indices = @transform_1, window_bounds = array<i64: 1, 128>}, {pipeline_mode = #tpu.pipeline_mode<synchronous>, transform_indices = @transform_2, window_bounds = array<i64: 1, 128>}, {transform_indices = @transform_3, window_bounds = array<i64: 256, 128>}]} {
    %c0 = arith.constant 0 : index
    %c0_0 = arith.constant 0 : index
    %0 = vector.load %arg1[%c0, %c0_0] : memref<256x128xf32, #tpu.memory_space<vmem>>, vector<256x128xf32>
    %c0_1 = arith.constant 0 : index
    %c0_2 = arith.constant 0 : index
    %1 = vector.load %arg2[%c0_1, %c0_2] : memref<1x128xf32, #tpu.memory_space<vmem>>, vector<1x128xf32>
    %2 = vector.broadcast %1 : vector<1x128xf32> to vector<256x128xf32>
    %3 = arith.mulf %0, %2 : vector<256x128xf32>
    %c0_3 = arith.constant 0 : index
    %c0_4 = arith.constant 0 : index
    %4 = vector.load %arg3[%c0_3, %c0_4] : memref<1x128xf32, #tpu.memory_space<vmem>>, vector<1x128xf32>
    %5 = vector.broadcast %4 : vector<1x128xf32> to vector<256x128xf32>
    %6 = arith.addf %3, %5 : vector<256x128xf32>
    %cst = arith.constant 0.000000e+00 : f32
    %7 = vector.broadcast %cst : f32 to vector<256x128xf32>
    %8 = arith.maximumf %6, %7 : vector<256x128xf32>
    %c0_5 = arith.constant 0 : index
    %c0_6 = arith.constant 0 : index
    %9 = vector.load %arg4[%c0_5, %c0_6] : memref<256x128xf32, #tpu.memory_space<vmem>>, vector<256x128xf32>
    tpu.vector_store %arg4[%c0_5, %c0_6], %8 {strides = array<i32>} : memref<256x128xf32, #tpu.memory_space<vmem>>, vector<256x128xf32>,
    return
  }
  func.func @transform_0(%arg0: i32) -> (i32, i32) {
    %c0_i32 = arith.constant 0 : i32
    %c0_i32_0 = arith.constant 0 : i32
    return %arg0, %c0_i32 : i32, i32
  }
  func.func @transform_1(%arg0: i32) -> (i32, i32) {
    %c0_i32 = arith.constant 0 : i32
    %c0_i32_0 = arith.constant 0 : i32
    %c0_i32_1 = arith.constant 0 : i32
    return %c0_i32, %c0_i32_0 : i32, i32
  }
  func.func @transform_2(%arg0: i32) -> (i32, i32) {
    %c0_i32 = arith.constant 0 : i32
    %c0_i32_0 = arith.constant 0 : i32
    %c0_i32_1 = arith.constant 0 : i32
    return %c0_i32, %c0_i32_0 : i32, i32
  }
  func.func @transform_3(%arg0: i32) -> (i32, i32) {
    %c0_i32 = arith.constant 0 : i32
    %c0_i32_0 = arith.constant 0 : i32
    return %arg0, %c0_i32 : i32, i32
  }
}

module attributes {stable_mosaic.version = 11 : i64} {
  func.func @_conv_stats_kernel(%arg0: i32, %arg1: memref<18x18x4xf32, #tpu.memory_space<vmem>>, %arg2: memref<9x4x128xbf16, #tpu.memory_space<vmem>>, %arg3: memref<256x128xf32, #tpu.memory_space<vmem>>, %arg4: memref<1x8x128xf32, #tpu.memory_space<vmem>>) attributes {dimension_semantics = [#tpu.dimension_semantics<parallel>], iteration_bounds = array<i64: 2>, scalar_prefetch = 0 : i64, scratch_operands = 0 : i64, tpu.core_type = #tpu.core_type<tc>, window_params = [{transform_indices = @transform_0, window_bounds = array<i64: 18, 18, 4>}, {pipeline_mode = #tpu.pipeline_mode<synchronous>, transform_indices = @transform_1, window_bounds = array<i64: 9, 4, 128>}, {transform_indices = @transform_2, window_bounds = array<i64: 256, 128>}, {transform_indices = @transform_3, window_bounds = array<i64: 1, 8, 128>}]} {
    %cst = arith.constant 0.000000e+00 : f32
    %0 = vector.broadcast %cst : f32 to vector<256x128xf32>
    %c0 = arith.constant 0 : index
    %c0_0 = arith.constant 0 : index
    %1 = vector.load %arg3[%c0, %c0_0] : memref<256x128xf32, #tpu.memory_space<vmem>>, vector<256x128xf32>
    tpu.vector_store %arg3[%c0, %c0_0], %0 {strides = array<i32>} : memref<256x128xf32, #tpu.memory_space<vmem>>, vector<256x128xf32>,
    %c0_1 = arith.constant 0 : index
    %c0_2 = arith.constant 0 : index
    %c0_3 = arith.constant 0 : index
    %2 = vector.load %arg1[%c0_1, %c0_2, %c0_3] : memref<18x18x4xf32, #tpu.memory_space<vmem>>, vector<16x16x4xf32>
    %3 = vector.shape_cast %2 : vector<16x16x4xf32> to vector<256x4xf32>
    %4 = arith.truncf %3 : vector<256x4xf32> to vector<256x4xbf16>
    %c0_4 = arith.constant 0 : index
    %c0_5 = arith.constant 0 : index
    %c0_6 = arith.constant 0 : index
    %5 = vector.load %arg2[%c0_4, %c0_5, %c0_6] : memref<9x4x128xbf16, #tpu.memory_space<vmem>>, vector<1x4x128xbf16>
    %6 = vector.shape_cast %5 : vector<1x4x128xbf16> to vector<4x128xbf16>
    %c0_7 = arith.constant 0 : index
    %c0_8 = arith.constant 0 : index
    %7 = vector.load %arg3[%c0_7, %c0_8] : memref<256x128xf32, #tpu.memory_space<vmem>>, vector<256x128xf32>
    %cst_9 = arith.constant dense<0.000000e+00> : vector<256x128xf32>
    %8 = tpu.matmul %4, %6, %cst_9 {dimension_numbers = #tpu.dot_dimension_numbers<[1], [0], [0], [1], [0, 0, 1, 1], [], []>} : vector<256x4xbf16>, vector<4x128xbf16>, vector<256x128xf32> -> vector<256x128xf32>
    %9 = arith.addf %7, %8 : vector<256x128xf32>
    %c0_10 = arith.constant 0 : index
    %c0_11 = arith.constant 0 : index
    %10 = vector.load %arg3[%c0_10, %c0_11] : memref<256x128xf32, #tpu.memory_space<vmem>>, vector<256x128xf32>
    tpu.vector_store %arg3[%c0_10, %c0_11], %9 {strides = array<i32>} : memref<256x128xf32, #tpu.memory_space<vmem>>, vector<256x128xf32>,
    %c0_12 = arith.constant 0 : index
    %c1 = arith.constant 1 : index
    %c0_13 = arith.constant 0 : index
    %11 = vector.load %arg1[%c0_12, %c1, %c0_13] : memref<18x18x4xf32, #tpu.memory_space<vmem>>, vector<16x16x4xf32>
    %12 = vector.shape_cast %11 : vector<16x16x4xf32> to vector<256x4xf32>
    %13 = arith.truncf %12 : vector<256x4xf32> to vector<256x4xbf16>
    %c1_14 = arith.constant 1 : index
    %c0_15 = arith.constant 0 : index
    %c0_16 = arith.constant 0 : index
    %14 = vector.load %arg2[%c1_14, %c0_15, %c0_16] : memref<9x4x128xbf16, #tpu.memory_space<vmem>>, vector<1x4x128xbf16>
    %15 = vector.shape_cast %14 : vector<1x4x128xbf16> to vector<4x128xbf16>
    %c0_17 = arith.constant 0 : index
    %c0_18 = arith.constant 0 : index
    %16 = vector.load %arg3[%c0_17, %c0_18] : memref<256x128xf32, #tpu.memory_space<vmem>>, vector<256x128xf32>
    %cst_19 = arith.constant dense<0.000000e+00> : vector<256x128xf32>
    %17 = tpu.matmul %13, %15, %cst_19 {dimension_numbers = #tpu.dot_dimension_numbers<[1], [0], [0], [1], [0, 0, 1, 1], [], []>} : vector<256x4xbf16>, vector<4x128xbf16>, vector<256x128xf32> -> vector<256x128xf32>
    %18 = arith.addf %16, %17 : vector<256x128xf32>
    %c0_20 = arith.constant 0 : index
    %c0_21 = arith.constant 0 : index
    %19 = vector.load %arg3[%c0_20, %c0_21] : memref<256x128xf32, #tpu.memory_space<vmem>>, vector<256x128xf32>
    tpu.vector_store %arg3[%c0_20, %c0_21], %18 {strides = array<i32>} : memref<256x128xf32, #tpu.memory_space<vmem>>, vector<256x128xf32>,
    %c0_22 = arith.constant 0 : index
    %c2 = arith.constant 2 : index
    %c0_23 = arith.constant 0 : index
    %20 = vector.load %arg1[%c0_22, %c2, %c0_23] : memref<18x18x4xf32, #tpu.memory_space<vmem>>, vector<16x16x4xf32>
    %21 = vector.shape_cast %20 : vector<16x16x4xf32> to vector<256x4xf32>
    %22 = arith.truncf %21 : vector<256x4xf32> to vector<256x4xbf16>
    %c2_24 = arith.constant 2 : index
    %c0_25 = arith.constant 0 : index
    %c0_26 = arith.constant 0 : index
    %23 = vector.load %arg2[%c2_24, %c0_25, %c0_26] : memref<9x4x128xbf16, #tpu.memory_space<vmem>>, vector<1x4x128xbf16>
    %24 = vector.shape_cast %23 : vector<1x4x128xbf16> to vector<4x128xbf16>
    %c0_27 = arith.constant 0 : index
    %c0_28 = arith.constant 0 : index
    %25 = vector.load %arg3[%c0_27, %c0_28] : memref<256x128xf32, #tpu.memory_space<vmem>>, vector<256x128xf32>
    %cst_29 = arith.constant dense<0.000000e+00> : vector<256x128xf32>
    %26 = tpu.matmul %22, %24, %cst_29 {dimension_numbers = #tpu.dot_dimension_numbers<[1], [0], [0], [1], [0, 0, 1, 1], [], []>} : vector<256x4xbf16>, vector<4x128xbf16>, vector<256x128xf32> -> vector<256x128xf32>
    %27 = arith.addf %25, %26 : vector<256x128xf32>
    %c0_30 = arith.constant 0 : index
    %c0_31 = arith.constant 0 : index
    %28 = vector.load %arg3[%c0_30, %c0_31] : memref<256x128xf32, #tpu.memory_space<vmem>>, vector<256x128xf32>
    tpu.vector_store %arg3[%c0_30, %c0_31], %27 {strides = array<i32>} : memref<256x128xf32, #tpu.memory_space<vmem>>, vector<256x128xf32>,
    %c1_32 = arith.constant 1 : index
    %c0_33 = arith.constant 0 : index
    %c0_34 = arith.constant 0 : index
    %29 = vector.load %arg1[%c1_32, %c0_33, %c0_34] : memref<18x18x4xf32, #tpu.memory_space<vmem>>, vector<16x16x4xf32>
    %30 = vector.shape_cast %29 : vector<16x16x4xf32> to vector<256x4xf32>
    %31 = arith.truncf %30 : vector<256x4xf32> to vector<256x4xbf16>
    %c3 = arith.constant 3 : index
    %c0_35 = arith.constant 0 : index
    %c0_36 = arith.constant 0 : index
    %32 = vector.load %arg2[%c3, %c0_35, %c0_36] : memref<9x4x128xbf16, #tpu.memory_space<vmem>>, vector<1x4x128xbf16>
    %33 = vector.shape_cast %32 : vector<1x4x128xbf16> to vector<4x128xbf16>
    %c0_37 = arith.constant 0 : index
    %c0_38 = arith.constant 0 : index
    %34 = vector.load %arg3[%c0_37, %c0_38] : memref<256x128xf32, #tpu.memory_space<vmem>>, vector<256x128xf32>
    %cst_39 = arith.constant dense<0.000000e+00> : vector<256x128xf32>
    %35 = tpu.matmul %31, %33, %cst_39 {dimension_numbers = #tpu.dot_dimension_numbers<[1], [0], [0], [1], [0, 0, 1, 1], [], []>} : vector<256x4xbf16>, vector<4x128xbf16>, vector<256x128xf32> -> vector<256x128xf32>
    %36 = arith.addf %34, %35 : vector<256x128xf32>
    %c0_40 = arith.constant 0 : index
    %c0_41 = arith.constant 0 : index
    %37 = vector.load %arg3[%c0_40, %c0_41] : memref<256x128xf32, #tpu.memory_space<vmem>>, vector<256x128xf32>
    tpu.vector_store %arg3[%c0_40, %c0_41], %36 {strides = array<i32>} : memref<256x128xf32, #tpu.memory_space<vmem>>, vector<256x128xf32>,
    %c1_42 = arith.constant 1 : index
    %c1_43 = arith.constant 1 : index
    %c0_44 = arith.constant 0 : index
    %38 = vector.load %arg1[%c1_42, %c1_43, %c0_44] : memref<18x18x4xf32, #tpu.memory_space<vmem>>, vector<16x16x4xf32>
    %39 = vector.shape_cast %38 : vector<16x16x4xf32> to vector<256x4xf32>
    %40 = arith.truncf %39 : vector<256x4xf32> to vector<256x4xbf16>
    %c4 = arith.constant 4 : index
    %c0_45 = arith.constant 0 : index
    %c0_46 = arith.constant 0 : index
    %41 = vector.load %arg2[%c4, %c0_45, %c0_46] : memref<9x4x128xbf16, #tpu.memory_space<vmem>>, vector<1x4x128xbf16>
    %42 = vector.shape_cast %41 : vector<1x4x128xbf16> to vector<4x128xbf16>
    %c0_47 = arith.constant 0 : index
    %c0_48 = arith.constant 0 : index
    %43 = vector.load %arg3[%c0_47, %c0_48] : memref<256x128xf32, #tpu.memory_space<vmem>>, vector<256x128xf32>
    %cst_49 = arith.constant dense<0.000000e+00> : vector<256x128xf32>
    %44 = tpu.matmul %40, %42, %cst_49 {dimension_numbers = #tpu.dot_dimension_numbers<[1], [0], [0], [1], [0, 0, 1, 1], [], []>} : vector<256x4xbf16>, vector<4x128xbf16>, vector<256x128xf32> -> vector<256x128xf32>
    %45 = arith.addf %43, %44 : vector<256x128xf32>
    %c0_50 = arith.constant 0 : index
    %c0_51 = arith.constant 0 : index
    %46 = vector.load %arg3[%c0_50, %c0_51] : memref<256x128xf32, #tpu.memory_space<vmem>>, vector<256x128xf32>
    tpu.vector_store %arg3[%c0_50, %c0_51], %45 {strides = array<i32>} : memref<256x128xf32, #tpu.memory_space<vmem>>, vector<256x128xf32>,
    %c1_52 = arith.constant 1 : index
    %c2_53 = arith.constant 2 : index
    %c0_54 = arith.constant 0 : index
    %47 = vector.load %arg1[%c1_52, %c2_53, %c0_54] : memref<18x18x4xf32, #tpu.memory_space<vmem>>, vector<16x16x4xf32>
    %48 = vector.shape_cast %47 : vector<16x16x4xf32> to vector<256x4xf32>
    %49 = arith.truncf %48 : vector<256x4xf32> to vector<256x4xbf16>
    %c5 = arith.constant 5 : index
    %c0_55 = arith.constant 0 : index
    %c0_56 = arith.constant 0 : index
    %50 = vector.load %arg2[%c5, %c0_55, %c0_56] : memref<9x4x128xbf16, #tpu.memory_space<vmem>>, vector<1x4x128xbf16>
    %51 = vector.shape_cast %50 : vector<1x4x128xbf16> to vector<4x128xbf16>
    %c0_57 = arith.constant 0 : index
    %c0_58 = arith.constant 0 : index
    %52 = vector.load %arg3[%c0_57, %c0_58] : memref<256x128xf32, #tpu.memory_space<vmem>>, vector<256x128xf32>
    %cst_59 = arith.constant dense<0.000000e+00> : vector<256x128xf32>
    %53 = tpu.matmul %49, %51, %cst_59 {dimension_numbers = #tpu.dot_dimension_numbers<[1], [0], [0], [1], [0, 0, 1, 1], [], []>} : vector<256x4xbf16>, vector<4x128xbf16>, vector<256x128xf32> -> vector<256x128xf32>
    %54 = arith.addf %52, %53 : vector<256x128xf32>
    %c0_60 = arith.constant 0 : index
    %c0_61 = arith.constant 0 : index
    %55 = vector.load %arg3[%c0_60, %c0_61] : memref<256x128xf32, #tpu.memory_space<vmem>>, vector<256x128xf32>
    tpu.vector_store %arg3[%c0_60, %c0_61], %54 {strides = array<i32>} : memref<256x128xf32, #tpu.memory_space<vmem>>, vector<256x128xf32>,
    %c2_62 = arith.constant 2 : index
    %c0_63 = arith.constant 0 : index
    %c0_64 = arith.constant 0 : index
    %56 = vector.load %arg1[%c2_62, %c0_63, %c0_64] : memref<18x18x4xf32, #tpu.memory_space<vmem>>, vector<16x16x4xf32>
    %57 = vector.shape_cast %56 : vector<16x16x4xf32> to vector<256x4xf32>
    %58 = arith.truncf %57 : vector<256x4xf32> to vector<256x4xbf16>
    %c6 = arith.constant 6 : index
    %c0_65 = arith.constant 0 : index
    %c0_66 = arith.constant 0 : index
    %59 = vector.load %arg2[%c6, %c0_65, %c0_66] : memref<9x4x128xbf16, #tpu.memory_space<vmem>>, vector<1x4x128xbf16>
    %60 = vector.shape_cast %59 : vector<1x4x128xbf16> to vector<4x128xbf16>
    %c0_67 = arith.constant 0 : index
    %c0_68 = arith.constant 0 : index
    %61 = vector.load %arg3[%c0_67, %c0_68] : memref<256x128xf32, #tpu.memory_space<vmem>>, vector<256x128xf32>
    %cst_69 = arith.constant dense<0.000000e+00> : vector<256x128xf32>
    %62 = tpu.matmul %58, %60, %cst_69 {dimension_numbers = #tpu.dot_dimension_numbers<[1], [0], [0], [1], [0, 0, 1, 1], [], []>} : vector<256x4xbf16>, vector<4x128xbf16>, vector<256x128xf32> -> vector<256x128xf32>
    %63 = arith.addf %61, %62 : vector<256x128xf32>
    %c0_70 = arith.constant 0 : index
    %c0_71 = arith.constant 0 : index
    %64 = vector.load %arg3[%c0_70, %c0_71] : memref<256x128xf32, #tpu.memory_space<vmem>>, vector<256x128xf32>
    tpu.vector_store %arg3[%c0_70, %c0_71], %63 {strides = array<i32>} : memref<256x128xf32, #tpu.memory_space<vmem>>, vector<256x128xf32>,
    %c2_72 = arith.constant 2 : index
    %c1_73 = arith.constant 1 : index
    %c0_74 = arith.constant 0 : index
    %65 = vector.load %arg1[%c2_72, %c1_73, %c0_74] : memref<18x18x4xf32, #tpu.memory_space<vmem>>, vector<16x16x4xf32>
    %66 = vector.shape_cast %65 : vector<16x16x4xf32> to vector<256x4xf32>
    %67 = arith.truncf %66 : vector<256x4xf32> to vector<256x4xbf16>
    %c7 = arith.constant 7 : index
    %c0_75 = arith.constant 0 : index
    %c0_76 = arith.constant 0 : index
    %68 = vector.load %arg2[%c7, %c0_75, %c0_76] : memref<9x4x128xbf16, #tpu.memory_space<vmem>>, vector<1x4x128xbf16>
    %69 = vector.shape_cast %68 : vector<1x4x128xbf16> to vector<4x128xbf16>
    %c0_77 = arith.constant 0 : index
    %c0_78 = arith.constant 0 : index
    %70 = vector.load %arg3[%c0_77, %c0_78] : memref<256x128xf32, #tpu.memory_space<vmem>>, vector<256x128xf32>
    %cst_79 = arith.constant dense<0.000000e+00> : vector<256x128xf32>
    %71 = tpu.matmul %67, %69, %cst_79 {dimension_numbers = #tpu.dot_dimension_numbers<[1], [0], [0], [1], [0, 0, 1, 1], [], []>} : vector<256x4xbf16>, vector<4x128xbf16>, vector<256x128xf32> -> vector<256x128xf32>
    %72 = arith.addf %70, %71 : vector<256x128xf32>
    %c0_80 = arith.constant 0 : index
    %c0_81 = arith.constant 0 : index
    %73 = vector.load %arg3[%c0_80, %c0_81] : memref<256x128xf32, #tpu.memory_space<vmem>>, vector<256x128xf32>
    tpu.vector_store %arg3[%c0_80, %c0_81], %72 {strides = array<i32>} : memref<256x128xf32, #tpu.memory_space<vmem>>, vector<256x128xf32>,
    %c2_82 = arith.constant 2 : index
    %c2_83 = arith.constant 2 : index
    %c0_84 = arith.constant 0 : index
    %74 = vector.load %arg1[%c2_82, %c2_83, %c0_84] : memref<18x18x4xf32, #tpu.memory_space<vmem>>, vector<16x16x4xf32>
    %75 = vector.shape_cast %74 : vector<16x16x4xf32> to vector<256x4xf32>
    %76 = arith.truncf %75 : vector<256x4xf32> to vector<256x4xbf16>
    %c8 = arith.constant 8 : index
    %c0_85 = arith.constant 0 : index
    %c0_86 = arith.constant 0 : index
    %77 = vector.load %arg2[%c8, %c0_85, %c0_86] : memref<9x4x128xbf16, #tpu.memory_space<vmem>>, vector<1x4x128xbf16>
    %78 = vector.shape_cast %77 : vector<1x4x128xbf16> to vector<4x128xbf16>
    %c0_87 = arith.constant 0 : index
    %c0_88 = arith.constant 0 : index
    %79 = vector.load %arg3[%c0_87, %c0_88] : memref<256x128xf32, #tpu.memory_space<vmem>>, vector<256x128xf32>
    %cst_89 = arith.constant dense<0.000000e+00> : vector<256x128xf32>
    %80 = tpu.matmul %76, %78, %cst_89 {dimension_numbers = #tpu.dot_dimension_numbers<[1], [0], [0], [1], [0, 0, 1, 1], [], []>} : vector<256x4xbf16>, vector<4x128xbf16>, vector<256x128xf32> -> vector<256x128xf32>
    %81 = arith.addf %79, %80 : vector<256x128xf32>
    %c0_90 = arith.constant 0 : index
    %c0_91 = arith.constant 0 : index
    %82 = vector.load %arg3[%c0_90, %c0_91] : memref<256x128xf32, #tpu.memory_space<vmem>>, vector<256x128xf32>
    tpu.vector_store %arg3[%c0_90, %c0_91], %81 {strides = array<i32>} : memref<256x128xf32, #tpu.memory_space<vmem>>, vector<256x128xf32>,
    %c0_92 = arith.constant 0 : index
    %c0_93 = arith.constant 0 : index
    %83 = vector.load %arg3[%c0_92, %c0_93] : memref<256x128xf32, #tpu.memory_space<vmem>>, vector<256x128xf32>
    %cst_94 = arith.constant dense<0.000000e+00> : vector<128xf32>
    %84 = vector.multi_reduction <add>, %83, %cst_94 [0] : vector<256x128xf32> to vector<128xf32>
    %85 = vector.shape_cast %84 : vector<128xf32> to vector<1x128xf32>
    %86 = arith.mulf %83, %83 : vector<256x128xf32>
    %cst_95 = arith.constant dense<0.000000e+00> : vector<128xf32>
    %87 = vector.multi_reduction <add>, %86, %cst_95 [0] : vector<256x128xf32> to vector<128xf32>
    %88 = vector.shape_cast %87 : vector<128xf32> to vector<1x128xf32>
    %cst_96 = arith.constant 0.000000e+00 : f32
    %89 = vector.broadcast %cst_96 : f32 to vector<6x128xf32>
    %90 = tpu.concatenate %85, %88, %89 in 0 : vector<1x128xf32>, vector<1x128xf32>, vector<6x128xf32> -> vector<8x128xf32>
    %c0_97 = arith.constant 0 : index
    %c0_98 = arith.constant 0 : index
    %c0_99 = arith.constant 0 : index
    %91 = vector.load %arg4[%c0_97, %c0_98, %c0_99] : memref<1x8x128xf32, #tpu.memory_space<vmem>>, vector<1x8x128xf32>
    %92 = vector.shape_cast %91 : vector<1x8x128xf32> to vector<8x128xf32>
    %93 = vector.shape_cast %90 : vector<8x128xf32> to vector<1x8x128xf32>
    tpu.vector_store %arg4[%c0_97, %c0_98, %c0_99], %93 {strides = array<i32>} : memref<1x8x128xf32, #tpu.memory_space<vmem>>, vector<1x8x128xf32>,
    return
  }
  func.func @transform_0(%arg0: i32) -> (i32, i32, i32) {
    %c0_i32 = arith.constant 0 : i32
    %c0_i32_0 = arith.constant 0 : i32
    %c0_i32_1 = arith.constant 0 : i32
    return %arg0, %c0_i32, %c0_i32_0 : i32, i32, i32
  }
  func.func @transform_1(%arg0: i32) -> (i32, i32, i32) {
    %c0_i32 = arith.constant 0 : i32
    %c0_i32_0 = arith.constant 0 : i32
    %c0_i32_1 = arith.constant 0 : i32
    %c0_i32_2 = arith.constant 0 : i32
    return %c0_i32, %c0_i32_0, %c0_i32_1 : i32, i32, i32
  }
  func.func @transform_2(%arg0: i32) -> (i32, i32) {
    %c0_i32 = arith.constant 0 : i32
    %c0_i32_0 = arith.constant 0 : i32
    return %arg0, %c0_i32 : i32, i32
  }
  func.func @transform_3(%arg0: i32) -> (i32, i32, i32) {
    %c0_i32 = arith.constant 0 : i32
    %c0_i32_0 = arith.constant 0 : i32
    %c0_i32_1 = arith.constant 0 : i32
    return %arg0, %c0_i32, %c0_i32_0 : i32, i32, i32
  }
}

</mosaic_0001>

<bundles_post_ra>
// kernel: conv_module_forward.3
= control target key start
LH: loop header
LB: loop body
LE: loop exit
PB: predicated region body
PF: predicated region fallthrough
CT: control target
= control target key end

     0   :  { %s453_s12 = smov 0   ;;  %s612_s0 = inlined_call_operand.vmem [shape: f32[512,128], index: 0, kind: input, shape index: {}]   ;;  %s613_s1 = inlined_call_operand.vmem [shape: f32[1,128], index: 1, kind: input, shape index: {}]   ;;  %s614_s2 = inlined_call_operand.vmem [shape: f32[1,128], index: 2, kind: input, shape index: {}]   ;;  %s615_s3 = inlined_call_operand.vmem [shape: f32[512,128], index: 3, kind: output, shape index: {}]  }
   0x1 LB: > { %s404_s13 = sadd.s32 4294967295, %s431_s12   ;;  %p408_p0 = scmp.ge.s32.totalorder %s431_s12, 1  ;;  %s431_s12 = sphi %s453_s12, %s13_s12  }
   0x2   : > { %p138_p1 = scmp.lt.s32.totalorder %s431_s12, 3 }
   0x4   : > { %p139_p2 = pnand %p408_p0, %p138_p1 }
   0x5   : > { %s409_s14 = sshll.u32 (!%p139_p2), %s404_s13, 5  ;;  %v464_v0 = vld [vmem:[%s613_s1] ss:$0 sm:$0xff] (!%p139_p2) }
   0x6   : > { %142 = sbr.rel (%p139_p2) target bundleno = 46 (0x2e), region = 32  ;;  %p163_p3 = scmp.lt.s32.totalorder (!%p139_p2), %s409_s14, 63  ;;  %v474_v1 = vld [vmem:[%s614_s2] ss:$0 sm:$0xff] (!%p139_p2) }
   0xd   : > { %s617_s14 = smov (!%p163_p3, %s409_s14), 63 }
   0xe   : > { %s410_s15 = sshll.u32 %s617_s14, 3 }
   0xf   : > { %s469_s20 = scalar_lea.vmem %s612_s0, %s410_s15  ;;  %s497_s25 = scalar_lea.vmem %s615_s3, %s410_s15 }
  0x10   : > { %v174_v2 = vld [vmem:[%s469_s20] sm:$0xff]  ;;  %v175_v3 = vld [vmem:[%s469_s20 + $0x8] sm:$0xff]  ;;  %v176_v4 = vld [vmem:[%s469_s20 + $0x10] sm:$0xff] }
  0x11   : > { %v213_v5 = vmul.f32 %v464_v0, %v174_v2  ;;  %v214_v6 = vmul.f32 %v464_v0, %v175_v3  ;;  %v215_v7 = vmul.f32 %v464_v0, %v176_v4  ;;  %v177_v8 = vld [vmem:[%s469_s20 + $0x18] sm:$0xff]  ;;  %v178_v9 = vld [vmem:[%s469_s20 + $0x20] sm:$0xff]  ;;  %v179_v10 = vld [vmem:[%s469_s20 + $0x28] sm:$0xff] }
  0x12   : > { %v216_v11 = vmul.f32 %v464_v0, %v177_v8  ;;  %v217_v12 = vmul.f32 %v464_v0, %v178_v9  ;;  %v218_v13 = vmul.f32 %v464_v0, %v179_v10  ;;  %v180_v14 = vld [vmem:[%s469_s20 + $0x30] sm:$0xff]  ;;  %v181_v15 = vld [vmem:[%s469_s20 + $0x38] sm:$0xff]  ;;  %v182_v24 = vld [vmem:[%s469_s20 + $0x40] sm:$0xff] }
  0x13   : > { %v252_v16 = vadd.f32 %v474_v1, %v213_v5  ;;  %v253_v17 = vadd.f32 %v474_v1, %v214_v6  ;;  %v254_v18 = vadd.f32 %v474_v1, %v215_v7  ;;  %v219_v19 = vmul.f32 %v464_v0, %v180_v14  ;;  %v183_v25 = vld [vmem:[%s469_s20 + $0x48] sm:$0xff]  ;;  %v184_v26 = vld [vmem:[%s469_s20 + $0x50] sm:$0xff]  ;;  %v185_v31 = vld [vmem:[%s469_s20 + $0x58] sm:$0xff] }
  0x14   : > { %v255_v20 = vadd.f32 %v474_v1, %v216_v11  ;;  %v256_v21 = vadd.f32 %v474_v1, %v217_v12  ;;  %v257_v22 = vadd.f32 %v474_v1, %v218_v13  ;;  %v220_v23 = vmul.f32 %v464_v0, %v181_v15  ;;  %v186_v32 = vld [vmem:[%s469_s20 + $0x60] sm:$0xff]  ;;  %v187_v33 = vld [vmem:[%s469_s20 + $0x68] sm:$0xff]  ;;  %v188_v38 = vld [vmem:[%s469_s20 + $0x70] sm:$0xff] }
  0x15   : > { %v284_v27 = vmax.f32 %v252_v16, 0.0  ;;  %v285_v28 = vmax.f32 %v253_v17, 0.0  ;;  %v286_v29 = vmax.f32 %v254_v18, 0.0  ;;  %v258_v30 = vadd.f32 %v474_v1, %v219_v19  ;;  %v189_v43 = vld [vmem:[%s469_s20 + $0x78] sm:$0xff]  ;;  %v190_v56 = vld [vmem:[%s469_s20 + $0x80] sm:$0xff]  ;;  %v191_v57 = vld [vmem:[%s469_s20 + $0x88] sm:$0xff] }
  0x16   : > { %v287_v34 = vmax.f32 %v255_v20, 0.0  ;;  %v288_v35 = vmax.f32 %v256_v21, 0.0  ;;  %v289_v36 = vmax.f32 %v257_v22, 0.0  ;;  %v259_v37 = vadd.f32 %v474_v1, %v220_v23  ;;  %v192_v58 = vld [vmem:[%s469_s20 + $0x90] sm:$0xff]  ;;  %v193_v63 = vld [vmem:[%s469_s20 + $0x98] sm:$0xff]  ;;  %v194_v2 = vld [vmem:[%s469_s20 + $0xa0] sm:$0xff] }
  0x17   : > { %316 = vst [vmem:[%s497_s25] sm:$0xff] %v284_v27  ;;  %317 = vst [vmem:[%s497_s25 + $0x8] sm:$0xff] %v285_v28  ;;  %v290_v39 = vmax.f32 %v258_v30, 0.0  ;;  %v221_v40 = vmul.f32 %v464_v0, %v182_v24  ;;  %v222_v41 = vmul.f32 %v464_v0, %v183_v25  ;;  %v223_v42 = vmul.f32 %v464_v0, %v184_v26  ;;  %v195_v3 = vld [vmem:[%s469_s20 + $0xa8] sm:$0xff]  ;;  %v196_v8 = vld [vmem:[%s469_s20 + $0xb0] sm:$0xff] }
  0x18   : > { %318 = vst [vmem:[%s497_s25 + $0x10] sm:$0xff] %v286_v29  ;;  %319 = vst [vmem:[%s497_s25 + $0x18] sm:$0xff] %v287_v34  ;;  %v291_v44 = vmax.f32 %v259_v37, 0.0  ;;  %v224_v45 = vmul.f32 %v464_v0, %v185_v31  ;;  %v225_v46 = vmul.f32 %v464_v0, %v186_v32  ;;  %v226_v47 = vmul.f32 %v464_v0, %v187_v33  ;;  %v197_v13 = vld [vmem:[%s469_s20 + $0xb8] sm:$0xff]  ;;  %v198_v26 = vld [vmem:[%s469_s20 + $0xc0] sm:$0xff] }
  0x19   : > { %320 = vst [vmem:[%s497_s25 + $0x20] sm:$0xff] %v288_v35  ;;  %321 = vst [vmem:[%s497_s25 + $0x28] sm:$0xff] %v289_v36  ;;  %v260_v48 = vadd.f32 %v474_v1, %v221_v40  ;;  %v261_v49 = vadd.f32 %v474_v1, %v222_v41  ;;  %v262_v50 = vadd.f32 %v474_v1, %v223_v42  ;;  %v199_v27 = vld [vmem:[%s469_s20 + $0xc8] sm:$0xff]  ;;  %v200_v28 = vld [vmem:[%s469_s20 + $0xd0] sm:$0xff] }
  0x1a   : > { %322 = vst [vmem:[%s497_s25 + $0x30] sm:$0xff] %v290_v39  ;;  %v227_v51 = vmul.f32 %v464_v0, %v188_v38  ;;  %323 = vst [vmem:[%s497_s25 + $0x38] sm:$0xff] %v291_v44  ;;  %v263_v52 = vadd.f32 %v474_v1, %v224_v45  ;;  %v264_v53 = vadd.f32 %v474_v1, %v225_v46  ;;  %v201_v33 = vld [vmem:[%s469_s20 + $0xd8] sm:$0xff]  ;;  %v202_v34 = vld [vmem:[%s469_s20 + $0xe0] sm:$0xff] }
  0x1b   : > { %v265_v54 = vadd.f32 %v474_v1, %v226_v47  ;;  %v228_v55 = vmul.f32 %v464_v0, %v189_v43  ;;  %v292_v59 = vmax.f32 %v260_v48, 0.0  ;;  %v293_v60 = vmax.f32 %v261_v49, 0.0  ;;  %v203_v35 = vld [vmem:[%s469_s20 + $0xe8] sm:$0xff]  ;;  %v204_v40 = vld [vmem:[%s469_s20 + $0xf0] sm:$0xff]  ;;  %v205_v45 = vld [vmem:[%s469_s20 + $0xf8] sm:$0xff] }
  0x1c   : > { %v294_v61 = vmax.f32 %v262_v50, 0.0  ;;  %v266_v62 = vadd.f32 %v474_v1, %v227_v51  ;;  %v295_v4 = vmax.f32 %v263_v52, 0.0  ;;  %v296_v5 = vmax.f32 %v264_v53, 0.0 }
  0x1d   : > { %v297_v6 = vmax.f32 %v265_v54, 0.0  ;;  %v267_v7 = vadd.f32 %v474_v1, %v228_v55  ;;  %324 = vst [vmem:[%s497_s25 + $0x40] sm:$0xff] %v292_v59  ;;  %325 = vst [vmem:[%s497_s25 + $0x48] sm:$0xff] %v293_v60  ;;  %v229_v10 = vmul.f32 %v464_v0, %v190_v56  ;;  %v230_v11 = vmul.f32 %v464_v0, %v191_v57 }
  0x1e   : > { %326 = vst [vmem:[%s497_s25 + $0x50] sm:$0xff] %v294_v61  ;;  %v298_v9 = vmax.f32 %v266_v62, 0.0  ;;  %v231_v12 = vmul.f32 %v464_v0, %v192_v58  ;;  %327 = vst [vmem:[%s497_s25 + $0x58] sm:$0xff] %v295_v4  ;;  %v232_v15 = vmul.f32 %v464_v0, %v193_v63  ;;  %v233_v16 = vmul.f32 %v464_v0, %v194_v2 }
  0x1f   : > { %328 = vst [vmem:[%s497_s25 + $0x60] sm:$0xff] %v296_v5  ;;  %329 = vst [vmem:[%s497_s25 + $0x68] sm:$0xff] %v297_v6  ;;  %v299_v14 = vmax.f32 %v267_v7, 0.0  ;;  %v234_v17 = vmul.f32 %v464_v0, %v195_v3  ;;  %v268_v18 = vadd.f32 %v474_v1, %v229_v10  ;;  %v269_v19 = vadd.f32 %v474_v1, %v230_v11 }
  0x20   : > { %330 = vst [vmem:[%s497_s25 + $0x70] sm:$0xff] %v298_v9  ;;  %v270_v20 = vadd.f32 %v474_v1, %v231_v12  ;;  %v235_v21 = vmul.f32 %v464_v0, %v196_v8  ;;  %v271_v22 = vadd.f32 %v474_v1, %v232_v15  ;;  %v272_v23 = vadd.f32 %v474_v1, %v233_v16 }
  0x21   : > { %331 = vst [vmem:[%s497_s25 + $0x78] sm:$0xff] %v299_v14  ;;  %v273_v24 = vadd.f32 %v474_v1, %v234_v17  ;;  %v236_v25 = vmul.f32 %v464_v0, %v197_v13  ;;  %v300_v29 = vmax.f32 %v268_v18, 0.0  ;;  %v301_v30 = vmax.f32 %v269_v19, 0.0 }
  0x22   : > { %v302_v31 = vmax.f32 %v270_v20, 0.0  ;;  %v274_v32 = vadd.f32 %v474_v1, %v235_v21  ;;  %v303_v36 = vmax.f32 %v271_v22, 0.0  ;;  %v304_v37 = vmax.f32 %v272_v23, 0.0 }
  0x23   : > { %v305_v38 = vmax.f32 %v273_v24, 0.0  ;;  %v275_v39 = vadd.f32 %v474_v1, %v236_v25  ;;  %332 = vst [vmem:[%s497_s25 + $0x80] sm:$0xff] %v300_v29  ;;  %333 = vst [vmem:[%s497_s25 + $0x88] sm:$0xff] %v301_v30  ;;  %v237_v42 = vmul.f32 %v464_v0, %v198_v26  ;;  %v238_v43 = vmul.f32 %v464_v0, %v199_v27 }
  0x24   : > { %334 = vst [vmem:[%s497_s25 + $0x90] sm:$0xff] %v302_v31  ;;  %v306_v41 = vmax.f32 %v274_v32, 0.0  ;;  %v239_v44 = vmul.f32 %v464_v0, %v200_v28  ;;  %335 = vst [vmem:[%s497_s25 + $0x98] sm:$0xff] %v303_v36  ;;  %v240_v47 = vmul.f32 %v464_v0, %v201_v33  ;;  %v241_v48 = vmul.f32 %v464_v0, %v202_v34 }
  0x25   : > { %336 = vst [vmem:[%s497_s25 + $0xa0] sm:$0xff] %v304_v37  ;;  %337 = vst [vmem:[%s497_s25 + $0xa8] sm:$0xff] %v305_v38  ;;  %v307_v46 = vmax.f32 %v275_v39, 0.0  ;;  %v242_v49 = vmul.f32 %v464_v0, %v203_v35  ;;  %v276_v50 = vadd.f32 %v474_v1, %v237_v42  ;;  %v277_v51 = vadd.f32 %v474_v1, %v238_v43 }
  0x26   : > { %338 = vst [vmem:[%s497_s25 + $0xb0] sm:$0xff] %v306_v41  ;;  %v278_v52 = vadd.f32 %v474_v1, %v239_v44  ;;  %v243_v53 = vmul.f32 %v464_v0, %v204_v40  ;;  %v279_v54 = vadd.f32 %v474_v1, %v240_v47  ;;  %v280_v55 = vadd.f32 %v474_v1, %v241_v48 }
  0x27   : > { %339 = vst [vmem:[%s497_s25 + $0xb8] sm:$0xff] %v307_v46  ;;  %v281_v56 = vadd.f32 %v474_v1, %v242_v49  ;;  %v244_v57 = vmul.f32 %v464_v0, %v205_v45  ;;  %v308_v58 = vmax.f32 %v276_v50, 0.0  ;;  %v309_v59 = vmax.f32 %v277_v51, 0.0 }
  0x28   : > { %v310_v60 = vmax.f32 %v278_v52, 0.0  ;;  %v282_v61 = vadd.f32 %v474_v1, %v243_v53  ;;  %v311_v62 = vmax.f32 %v279_v54, 0.0  ;;  %v312_v63 = vmax.f32 %v280_v55, 0.0 }
  0x29   : > { %v313_v2 = vmax.f32 %v281_v56, 0.0  ;;  %v283_v3 = vadd.f32 %v474_v1, %v244_v57  ;;  %340 = vst [vmem:[%s497_s25 + $0xc0] sm:$0xff] %v308_v58  ;;  %341 = vst [vmem:[%s497_s25 + $0xc8] sm:$0xff] %v309_v59 }
  0x2a   : > { %342 = vst [vmem:[%s497_s25 + $0xd0] sm:$0xff] %v310_v60  ;;  %v314_v4 = vmax.f32 %v282_v61, 0.0  ;;  %343 = vst [vmem:[%s497_s25 + $0xd8] sm:$0xff] %v311_v62 }
  0x2b   : > { %344 = vst [vmem:[%s497_s25 + $0xe0] sm:$0xff] %v312_v63  ;;  %345 = vst [vmem:[%s497_s25 + $0xe8] sm:$0xff] %v313_v2  ;;  %v315_v0 = vmax.f32 %v283_v3, 0.0 }
  0x2c   : > { %346 = vst [vmem:[%s497_s25 + $0xf0] sm:$0xff] %v314_v4 }
  0x2d   : > { %347 = vst [vmem:[%s497_s25 + $0xf8] sm:$0xff] %v315_v0 }
  0x2e PF: > { %s13_s12 = sadd.s32 1, %s431_s12  }
  0x2f   : > { %p10_p4 = scmp.ge.s32.totalorder %s13_s12, 4  }
  0x31   :  { %12 = sbr.rel (!%p10_p4) target bundleno = 1 (0x1), region = 62 }

// kernel: conv_module_forward.2
= control target key start
LH: loop header
LB: loop body
LE: loop exit
PB: predicated region body
PF: predicated region fallthrough
CT: control target
= control target key end

     0   :  { %s4955_s12 = smov 0   ;;  %s5586_s0 = inlined_call_operand.vmem [shape: f32[36,18,4], index: 0, kind: input, shape index: {}]   ;;  %s5587_s1 = inlined_call_operand.vmem [shape: bf16[9,4,128], index: 1, kind: input, shape index: {}]   ;;  %s5588_s2 = inlined_call_operand.vmem [shape: f32[512,128], index: 2, kind: output, shape index: {0}]   ;;  %s5589_s3 = inlined_call_operand.vmem [shape: f32[2,8,128], index: 3, kind: output, shape index: {1}]  }
   0x1 LB: > { %s4961_s13 = sadd.s32 4294967295, %s4933_s12   ;;  %p3679_p0 = scmp.ge.s32.totalorder %s4933_s12, 1  ;;  %s4933_s12 = sphi %s4955_s12, %s14_s12  }
   0x2   : > { %p142_p1 = scmp.lt.s32.totalorder %s4933_s12, 3 }
   0x4   : > { %p143_p2 = pnand %p3679_p0, %p142_p1 }
   0x5   : > { %v269_v0 = vld [vmem:[%s5587_s1] sm:$0x3] (!%p143_p2)  ;;  %vm351_vm0 = vcmask (!%p143_p2), 1041408   ;;  %v4971_v1 = vld [vmem:[%s5587_s1 + $0x8] sm:$0x3] (!%p143_p2)  ;;  %s171_s18 = smul.u32 (!%p143_p2), 18, %s4961_s13 }
   0x6   : > { %146 = sbr.rel (%p143_p2) target bundleno = 543 (0x21f), region = 28  ;;  %4907 = vmatprep.subr.msk.bf16.mxu1 (!%p143_p2), %vm351_vm0, %v269_v0  ;;  %v353_v2 = vsel (!%p143_p2), %vm351_vm0, %v269_v0, 0  ;;  %4911 = vmatprep.subr.msk.bf16.mxu0 (!%p143_p2), %vm351_vm0, %v4971_v1  ;;  %v4980_v3 = vsel (!%p143_p2), %vm351_vm0, %v4971_v1, 0  ;;  %v3700_v4 = vld [vmem:[%s5587_s1 + $0x2] sm:$0x3] (!%p143_p2)  ;;  %vm302_vm1 = vcmask (!%p143_p2), 31744  }
   0x7   : > { %4184 = vmatpush3.bf16.msra.mxu1 (!%p143_p2), %v353_v2  ;;  %4320 = vmatpush3.bf16.msra.mxu0 (!%p143_p2), %v4980_v3  ;;  %p172_p3 = scmp.lt.s32.totalorder (!%p143_p2), %s171_s18, 35  ;;  %v3864_v5 = vld [vmem:[%s5587_s1 + $0xa] sm:$0x3] (!%p143_p2)  ;;  %v711_v15 = vsel (!%p143_p2), %vm351_vm0, %v3700_v4, 0  ;;  %v5028_v26 = vld [vmem:[%s5587_s1 + $0xc] sm:$0x3] (!%p143_p2) }
   0x8   : > { %4908 = vmatprep.subr.msk.bf16.mxu1 (!%p143_p2), %vm351_vm0, %v3700_v4  ;;  %4913 = vmatprep.subr.msk.bf16.mxu0 (!%p143_p2), %vm351_vm0, %v3864_v5  ;;  %v2144_v25 = vsel (!%p143_p2), %vm351_vm0, %v3864_v5, 0  ;;  %v5033_v27 = vld [vmem:[%s5587_s1 + $0x4] sm:$0x3] (!%p143_p2)  ;;  %s3681_s10 = sshll.u32 (!%p143_p2), %s4961_s13, 5  ;;  %p184_p5 = scmp.lt.s32.totalorder (!%p143_p2), %s4961_s13, 1  ;;  %vm3584_vm2 = vcmask (!%p143_p2), 1040384  }
   0x9   : > { %p179_p4 = scmp.lt.s32.totalorder (!%p143_p2), %s3681_s10, 63 }
   0xd   : > { %s5591_s18 = smov (!%p172_p3, %s171_s18), 35  ;;  %s5593_s10 = smov (!%p179_p4, %s3681_s10), 63 }
   0xe   : > { %s4917_s23 = smul.u32 24, %s5591_s18  ;;  %s3682_s11 = sshll.u32 %s5593_s10, 3 }
   0xf   : > { %s5538_s16 = scalar_lea.vmem %s5588_s2, %s3682_s11  ;;  %s5595_s13 = smov (!%p184_p5, %s4961_s13), 1 }
  0x10   : > { %s4994_s26 = scalar_lea.vmem %s5586_s0, %s4917_s23  ;;  %s3683_s17 = sshll.u32 %s5595_s13, 3 }
  0x11   : > { %v221_v6 = vld [vmem:[%s4994_s26] sm:$0xff]  ;;  %v222_v7 = vld [vmem:[%s4994_s26 + $0x8] sm:$0xff]  ;;  %v223_v11 = vld [vmem:[%s4994_s26 + $0x18] sm:$0xff]  ;;  %s187_s20 = scalar_lea.vmem %s5589_s3, %s3683_s17 }
  0x12   : > { %v3783_v8 = vld [vmem:[%s4994_s26 + $0x19] sm:$0xff]  ;;  %v253_v9 = vpack.c.bf16 %v222_v7, %v221_v6  ;;  %v3784_v10 = vld [vmem:[%s4994_s26 + $0x21] sm:$0xff]  ;;  %v3785_v16 = vld [vmem:[%s4994_s26 + $0x31] sm:$0xff] }
  0x13   : > { %v224_v12 = vld [vmem:[%s4994_s26 + $0x20] sm:$0xff]  ;;  %v5002_v13 = vpack.c.bf16 %v3784_v10, %v3783_v8  ;;  %v225_v18 = vld [vmem:[%s4994_s26 + $0x30] sm:$0xff]  ;;  %v226_v20 = vld [vmem:[%s4994_s26 + $0x38] sm:$0xff] }
  0x14   : > { %v5004_v14 = vpack.c.bf16 %v224_v12, %v223_v11  ;;  %v3786_v17 = vld [vmem:[%s4994_s26 + $0x39] sm:$0xff]  ;;  %4185 = vmatprep.mubr.msk.bf16.mxu1 %vm302_vm1, %v253_v9  ;;  %v3787_v21 = vld [vmem:[%s4994_s26 + $0x49] sm:$0xff]  ;;  %v3788_v22 = vld [vmem:[%s4994_s26 + $0x51] sm:$0xff]  ;;  %v5020_v23 = vpack.c.bf16 %v226_v20, %v225_v18 }
  0x15   : > { %v5011_v19 = vpack.c.bf16 %v3786_v17, %v3785_v16  ;;  %4321 = vmatprep.mubr.msk.bf16.mxu0 %vm302_vm1, %v5002_v13  ;;  %v5022_v24 = vpack.c.bf16 %v3788_v22, %v3787_v21  ;;  %v227_v28 = vld [vmem:[%s4994_s26 + $0x48] sm:$0xff]  ;;  %v228_v29 = vld [vmem:[%s4994_s26 + $0x50] sm:$0xff]  ;;  %v229_v32 = vld [vmem:[%s4994_s26 + $0x60] sm:$0xff]  ;;  %v2503_v16 = vsel %vm351_vm0, %v5028_v26, 0 }
  0x16   : > { %4186 = vmatmul.mubr.msk.bf16.vlgmr.msra.gmra.mrb[0].mxu1 %vm302_vm1, %v5004_v14  ;;  %v3789_v30 = vld [vmem:[%s4994_s26 + $0x61] sm:$0xff]  ;;  %v3790_v31 = vld [vmem:[%s4994_s26 + $0x69] sm:$0xff]  ;;  %v3791_v34 = vld [vmem:[%s4994_s26 + $0x79] sm:$0xff]  ;;  %v5051_v36 = vpack.c.bf16 %v228_v29, %v227_v28 }
  0x17   : > { %4218 = vmatpush3.bf16.msra.mxu1 %v711_v15  ;;  %4322 = vmatmul.mubr.msk.bf16.vlgmr.msra.gmra.mrb[0].mxu0 %vm302_vm1, %v5011_v19  ;;  %v230_v33 = vld [vmem:[%s4994_s26 + $0x68] sm:$0xff]  ;;  %v5055_v37 = vpack.c.bf16 %v3790_v31, %v3789_v30  ;;  %v231_v40 = vld [vmem:[%s4994_s26 + $0x78] sm:$0xff]  ;;  %v232_v41 = vld [vmem:[%s4994_s26 + $0x80] sm:$0xff] }
  0x18   : > { %4189 = vmatprep.mubr.msk.bf16.mxu1 %vm302_vm1, %v5020_v23  ;;  %4325 = vmatprep.mubr.msk.bf16.mxu0 %vm302_vm1, %v5022_v24  ;;  %v3792_v35 = vld [vmem:[%s4994_s26 + $0x81] sm:$0xff]  ;;  %v5057_v38 = vpack.c.bf16 %v230_v33, %v229_v32  ;;  %v3793_v42 = vld [vmem:[%s4994_s26 + $0x91] sm:$0xff]  ;;  %v3794_v43 = vld [vmem:[%s4994_s26 + $0x99] sm:$0xff]  ;;  %v5077_v48 = vpack.c.bf16 %v232_v41, %v231_v40 }
  0x19   : > { %4354 = vmatpush3.bf16.msra.mxu0 %v2144_v25  ;;  %4909 = vmatprep.subr.msk.bf16.mxu1 %vm351_vm0, %v5033_v27  ;;  %v5059_v39 = vpack.c.bf16 %v3792_v35, %v3791_v34  ;;  %v233_v44 = vld [vmem:[%s4994_s26 + $0x90] sm:$0xff]  ;;  %v234_v45 = vld [vmem:[%s4994_s26 + $0x98] sm:$0xff]  ;;  %v5079_v49 = vpack.c.bf16 %v3794_v43, %v3793_v42  ;;  %v235_v52 = vld [vmem:[%s4994_s26 + $0xa8] sm:$0xff] }
  0x1a   : > { %4914 = vmatprep.subr.msk.bf16.mxu0 %vm351_vm0, %v5028_v26  ;;  %v3795_v46 = vld [vmem:[%s4994_s26 + $0xa9] sm:$0xff]  ;;  %v3796_v47 = vld [vmem:[%s4994_s26 + $0xb1] sm:$0xff]  ;;  %v5081_v50 = vpack.c.bf16 %v234_v45, %v233_v44  ;;  %v3797_v54 = vld [vmem:[%s4994_s26 + $0xc1] sm:$0xff] }
  0x1b   : > { %v5083_v51 = vpack.c.bf16 %v3796_v47, %v3795_v46  ;;  %v236_v53 = vld [vmem:[%s4994_s26 + $0xb0] sm:$0xff]  ;;  %v237_v56 = vld [vmem:[%s4994_s26 + $0xc0] sm:$0xff]  ;;  %v238_v57 = vld [vmem:[%s4994_s26 + $0xc8] sm:$0xff] }
  0x1c   : > { %v3798_v55 = vld [vmem:[%s4994_s26 + $0xc9] sm:$0xff]  ;;  %v3832_v58 = vld [vmem:[%s4994_s26 + $0x1a] sm:$0xff]  ;;  %v5101_v60 = vpack.c.bf16 %v236_v53, %v235_v52  ;;  %v5105_v62 = vpack.c.bf16 %v238_v57, %v237_v56  ;;  %v3834_v4 = vld [vmem:[%s4994_s26 + $0x32] sm:$0xff] }
  0x1d   : > { %v3833_v59 = vld [vmem:[%s4994_s26 + $0x22] sm:$0xff]  ;;  %v5103_v61 = vpack.c.bf16 %v3798_v55, %v3797_v54  ;;  %v239_v0 = vld [vmem:[%s4994_s26 + $0xd8] sm:$0xff]  ;;  %v241_v6 = vld [vmem:[%s4994_s26 + $0xf0] sm:$0xff] }
  0x1e   : > { %4190 = vmatmul.mubr.msk.bf16.gmra.mrb[4].mxu1 %vm302_vm1, %v5051_v36  ;;  %v5107_v63 = vpack.c.bf16 %v3833_v59, %v3832_v58  ;;  %v240_v2 = vld [vmem:[%s4994_s26 + $0xe0] sm:$0xff]  ;;  %v242_v7 = vld [vmem:[%s4994_s26 + $0xf8] sm:$0xff]  ;;  %v3836_v8 = vld [vmem:[%s4994_s26 + $0x4a] sm:$0xff] }
  0x1f   : > { %4326 = vmatmul.mubr.msk.bf16.gmra.mrb[4].mxu0 %vm302_vm1, %v5055_v37  ;;  %4193 = vmatprep.mubr.msk.bf16.mxu1 %vm302_vm1, %v5057_v38  ;;  %v3835_v5 = vld [vmem:[%s4994_s26 + $0x3a] sm:$0xff]  ;;  %v3837_v9 = vld [vmem:[%s4994_s26 + $0x52] sm:$0xff]  ;;  %v5125_v10 = vpack.c.bf16 %v240_v2, %v239_v0  ;;  %v5129_v12 = vpack.c.bf16 %v242_v7, %v241_v6  ;;  %v5140_v17 = vld [vmem:[%s5587_s1 + $0xe] sm:$0x3] }
  0x20   : > { %4329 = vmatprep.mubr.msk.bf16.mxu0 %vm302_vm1, %v5059_v39  ;;  %v5127_v11 = vpack.c.bf16 %v3835_v5, %v3834_v4  ;;  %v5131_v15 = vpack.c.bf16 %v3837_v9, %v3836_v8  ;;  %v243_v18 = vld [vmem:[%s4994_s26 + $0x108] sm:$0xff]  ;;  %v244_v20 = vld [vmem:[%s4994_s26 + $0x110] sm:$0xff]  ;;  %v245_v25 = vld [vmem:[%s4994_s26 + $0x120] sm:$0xff] }
  0x21   : > { %v3838_v21 = vld [vmem:[%s4994_s26 + $0x62] sm:$0xff]  ;;  %v3839_v22 = vld [vmem:[%s4994_s26 + $0x6a] sm:$0xff]  ;;  %v3840_v28 = vld [vmem:[%s4994_s26 + $0x7a] sm:$0xff]  ;;  %v5158_v30 = vpack.c.bf16 %v244_v20, %v243_v18 }
  0x22   : > { %v246_v26 = vld [vmem:[%s4994_s26 + $0x128] sm:$0xff]  ;;  %v5160_v31 = vpack.c.bf16 %v3839_v22, %v3838_v21  ;;  %v247_v34 = vld [vmem:[%s4994_s26 + $0x138] sm:$0xff]  ;;  %v248_v35 = vld [vmem:[%s4994_s26 + $0x140] sm:$0xff]  ;;  %v1069_v21 = vsel %vm351_vm0, %v5033_v27, 0 }
  0x23   : > { %v3841_v29 = vld [vmem:[%s4994_s26 + $0x82] sm:$0xff]  ;;  %v5162_v32 = vpack.c.bf16 %v246_v26, %v245_v25  ;;  %v3842_v40 = vld [vmem:[%s4994_s26 + $0x92] sm:$0xff]  ;;  %v3843_v41 = vld [vmem:[%s4994_s26 + $0x9a] sm:$0xff]  ;;  %v5182_v46 = vpack.c.bf16 %v248_v35, %v247_v34 }
  0x24   : > { %v5164_v33 = vpack.c.bf16 %v3841_v29, %v3840_v28  ;;  %v249_v42 = vld [vmem:[%s4994_s26 + $0x150] sm:$0xff]  ;;  %v250_v43 = vld [vmem:[%s4994_s26 + $0x158] sm:$0xff]  ;;  %v5184_v47 = vpack.c.bf16 %v3843_v41, %v3842_v40  ;;  %v251_v54 = vld [vmem:[%s4994_s26 + $0x168] sm:$0xff] }
  0x25   : > { %v3844_v44 = vld [vmem:[%s4994_s26 + $0xaa] sm:$0xff]  ;;  %v3845_v45 = vld [vmem:[%s4994_s26 + $0xb2] sm:$0xff]  ;;  %v5186_v52 = vpack.c.bf16 %v250_v43, %v249_v42  ;;  %v3846_v56 = vld [vmem:[%s4994_s26 + $0xc2] sm:$0xff] }
  0x26   : > { %4194 = vmatmul.mubr.msk.bf16.gmra.mrb[8].mxu1 %vm302_vm1, %v5077_v48  ;;  %v5188_v53 = vpack.c.bf16 %v3845_v45, %v3844_v44  ;;  %v252_v55 = vld [vmem:[%s4994_s26 + $0x170] sm:$0xff]  ;;  %v580_v58 = vld [vmem:[%s4994_s26 + $0x1] sm:$0xff] }
  0x27   : > { %4330 = vmatmul.mubr.msk.bf16.gmra.mrb[8].mxu0 %vm302_vm1, %v5079_v49  ;;  %4197 = vmatprep.mubr.msk.bf16.mxu1 %vm302_vm1, %v5081_v50  ;;  %v3847_v57 = vld [vmem:[%s4994_s26 + $0xca] sm:$0xff]  ;;  %v3848_v0 = vld [vmem:[%s4994_s26 + $0xda] sm:$0xff]  ;;  %v3849_v2 = vld [vmem:[%s4994_s26 + $0xe2] sm:$0xff]  ;;  %v5206_v4 = vpack.c.bf16 %v252_v55, %v251_v54 }
  0x28   : > { %4333 = vmatprep.mubr.msk.bf16.mxu0 %vm302_vm1, %v5083_v51  ;;  %v581_v59 = vld [vmem:[%s4994_s26 + $0x9] sm:$0xff]  ;;  %v5208_v5 = vpack.c.bf16 %v3847_v57, %v3846_v56  ;;  %v5210_v7 = vpack.c.bf16 %v3849_v2, %v3848_v0  ;;  %v3850_v8 = vld [vmem:[%s4994_s26 + $0xf2] sm:$0xff]  ;;  %v3851_v9 = vld [vmem:[%s4994_s26 + $0xfa] sm:$0xff] }
  0x29   : > { %v612_v6 = vpack.c.bf16 %v581_v59, %v580_v58  ;;  %v3853_v18 = vld [vmem:[%s4994_s26 + $0x112] sm:$0xff]  ;;  %v5223_v20 = vpack.c.bf16 %v3851_v9, %v3850_v8  ;;  %v5234_v25 = vld [vmem:[%s5587_s1 + $0x6] sm:$0x3]  ;;  %v3855_v27 = vld [vmem:[%s4994_s26 + $0x12a] sm:$0xff] }
  0x2a   : > { %v3856_v26 = vld [vmem:[%s4994_s26 + $0x13a] sm:$0xff]  ;;  %v3857_v28 = vld [vmem:[%s4994_s26 + $0x142] sm:$0xff]  ;;  %v3858_v35 = vld [vmem:[%s4994_s26 + $0x152] sm:$0xff] }
  0x2b   : > { %v5250_v34 = vpack.c.bf16 %v3857_v28, %v3856_v26  ;;  %v3859_v40 = vld [vmem:[%s4994_s26 + $0x15a] sm:$0xff]  ;;  %v3860_v41 = vld [vmem:[%s4994_s26 + $0x16a] sm:$0xff]  ;;  %v3861_v42 = vld [vmem:[%s4994_s26 + $0x172] sm:$0xff] }
  0x2c   : > { %v5264_v43 = vpack.c.bf16 %v3859_v40, %v3858_v35  ;;  %v5266_v44 = vpack.c.bf16 %v3861_v42, %v3860_v41  ;;  %v3862_v45 = vld [vmem:[%s4994_s26 + $0x182] sm:$0xff]  ;;  %v3863_v54 = vld [vmem:[%s4994_s26 + $0x18a] sm:$0xff]  ;;  %v598_v56 = vld [vmem:[%s4994_s26 + $0xd9] sm:$0xff] }
  0x2d   : > { %v5278_v55 = vpack.c.bf16 %v3863_v54, %v3862_v45  ;;  %v599_v57 = vld [vmem:[%s4994_s26 + $0xe1] sm:$0xff]  ;;  %v600_v58 = vld [vmem:[%s4994_s26 + $0xf1] sm:$0xff]  ;;  %v601_v59 = vld [vmem:[%s4994_s26 + $0xf9] sm:$0xff] }
  0x2e   : > { %4198 = vmatmul.mubr.msk.bf16.gmra.mrb[12].mxu1 %vm302_vm1, %v5101_v60  ;;  %v5292_v0 = vpack.c.bf16 %v599_v57, %v598_v56  ;;  %v5294_v2 = vpack.c.bf16 %v601_v59, %v600_v58  ;;  %v4011_v8 = vld [vmem:[%s5587_s1 + $0x10] sm:$0x3]  ;;  %v607_v26 = vld [vmem:[%s4994_s26 + $0x141] sm:$0xff]  ;;  %v609_v35 = vld [vmem:[%s4994_s26 + $0x159] sm:$0xff]  ;;  %v1428_v59 = vsel %vm351_vm0, %v5234_v25, 0 }
  0x2f   : > { %4334 = vmatmul.mubr.msk.bf16.gmra.mrb[12].mxu0 %vm302_vm1, %v5103_v61  ;;  %4201 = vmatprep.mubr.msk.bf16.mxu1 %vm302_vm1, %v5105_v62  ;;  %v602_v9 = vld [vmem:[%s4994_s26 + $0x109] sm:$0xff]  ;;  %v608_v28 = vld [vmem:[%s4994_s26 + $0x151] sm:$0xff] }
  0x30   : > { %4355 = vmatprep.mubr.msk.bf16.mxu0 %vm302_vm1, %v5107_v63  ;;  %v5332_v41 = vpack.c.bf16 %v609_v35, %v608_v28  ;;  %v610_v42 = vld [vmem:[%s4994_s26 + $0x169] sm:$0xff]  ;;  %v611_v45 = vld [vmem:[%s4994_s26 + $0x171] sm:$0xff] }
  0x31   : > { %v938_v54 = vld [vmem:[%s4994_s26 + $0x2] sm:$0xff]  ;;  %v939_v56 = vld [vmem:[%s4994_s26 + $0xa] sm:$0xff]  ;;  %v5346_v57 = vpack.c.bf16 %v611_v45, %v610_v42 }
  0x32   : > { %v970_v58 = vpack.c.bf16 %v939_v56, %v938_v54 }
  0x36   : > { %4202 = vmatmul.mubr.msk.bf16.gmra.mrb[16].mxu1 %vm302_vm1, %v5125_v10 }
  0x37   : > { %4356 = vmatmul.mubr.msk.bf16.vlgmr.msra.gmra.mrb[0].mxu0 %vm302_vm1, %v5127_v11  ;;  %4205 = vmatprep.mubr.msk.bf16.mxu1 %vm302_vm1, %v5129_v12 }
  0x38   : > { %4359 = vmatprep.mubr.msk.bf16.mxu0 %vm302_vm1, %v5131_v15  ;;  %4388 = vmatpush3.bf16.msra.mxu0 %v2503_v16  ;;  %v3852_v16 = vld [vmem:[%s4994_s26 + $0x10a] sm:$0xff] }
  0x39   : > { %4915 = vmatprep.subr.msk.bf16.mxu0 %vm351_vm0, %v5140_v17  ;;  %v5227_v22 = vpack.c.bf16 %v3853_v18, %v3852_v16  ;;  %v603_v16 = vld [vmem:[%s4994_s26 + $0x111] sm:$0xff]  ;;  %v605_v18 = vld [vmem:[%s4994_s26 + $0x129] sm:$0xff] }
  0x3e   : > { %4206 = vmatmul.mubr.msk.bf16.gmra.mrb[20].mxu1 %vm302_vm1, %v5158_v30 }
  0x3f   : > { %4360 = vmatmul.mubr.msk.bf16.gmra.mrb[4].mxu0 %vm302_vm1, %v5160_v31  ;;  %4209 = vmatprep.mubr.msk.bf16.mxu1 %vm302_vm1, %v5162_v32 }
  0x40   : > { %4363 = vmatprep.mubr.msk.bf16.mxu0 %vm302_vm1, %v5164_v33 }
  0x46   : > { %4210 = vmatmul.mubr.msk.bf16.gmra.mrb[24].mxu1 %vm302_vm1, %v5182_v46 }
  0x47   : > { %4364 = vmatmul.mubr.msk.bf16.gmra.mrb[8].mxu0 %vm302_vm1, %v5184_v47  ;;  %4213 = vmatprep.mubr.msk.bf16.mxu1 %vm302_vm1, %v5186_v52 }
  0x48   : > { %4367 = vmatprep.mubr.msk.bf16.mxu0 %vm302_vm1, %v5188_v53 }
  0x4e   : > { %4214 = vmatmul.mubr.msk.bf16.gmra.mrb[28].mxu1 %vm302_vm1, %v5206_v4 }
  0x4f   : > { %4368 = vmatmul.mubr.msk.bf16.gmra.mrb[12].mxu0 %vm302_vm1, %v5208_v5  ;;  %4219 = vmatprep.mubr.msk.bf16.mxu1 %vm302_vm1, %v612_v6  ;;  %v2861_v6 = vsel %vm351_vm0, %v5140_v17, 0  ;;  %v604_v17 = vld [vmem:[%s4994_s26 + $0x121] sm:$0xff] }
  0x50   : > { %4371 = vmatprep.mubr.msk.bf16.mxu0 %vm302_vm1, %v5210_v7 }
  0x56   : > { %4220 = vmatmul.mubr.msk.bf16.vlgmr.msra.gmra.mrb[0].mxu1 %vm302_vm1, %v5002_v13  ;;  %v3854_v13 = vld [vmem:[%s4994_s26 + $0x122] sm:$0xff] }
  0x57   : > { %4252 = vmatpush3.bf16.msra.mxu1 %v1069_v21  ;;  %4372 = vmatmul.mubr.msk.bf16.gmra.mrb[16].mxu0 %vm302_vm1, %v5223_v20  ;;  %v5248_v29 = vpack.c.bf16 %v3855_v27, %v3854_v13  ;;  %v5314_v21 = vpack.c.bf16 %v603_v16, %v602_v9  ;;  %v5316_v13 = vpack.c.bf16 %v605_v18, %v604_v17  ;;  %v606_v27 = vld [vmem:[%s4994_s26 + $0x139] sm:$0xff]  ;;  %v3219_v17 = vsel %vm351_vm0, %v4011_v8, 0 }
  0x58   : > { %4223 = vmatprep.mubr.msk.bf16.mxu1 %vm302_vm1, %v5011_v19  ;;  %4375 = vmatprep.mubr.msk.bf16.mxu0 %vm302_vm1, %v5227_v22  ;;  %v5330_v40 = vpack.c.bf16 %v607_v26, %v606_v27  ;;  %v3912_v9 = vld [vmem:[%s4994_s26 + $0x1a0] sm:$0xff] }
  0x59   : > { %4910 = vmatprep.subr.msk.bf16.mxu1 %vm351_vm0, %v5234_v25  ;;  %v3910_v25 = vld [vmem:[%s4994_s26 + $0x188] sm:$0xff] }
  0x5e   : > { %4224 = vmatmul.mubr.msk.bf16.gmra.mrb[4].mxu1 %vm302_vm1, %v5022_v24 }
  0x5f   : > { %4376 = vmatmul.mubr.msk.bf16.gmra.mrb[20].mxu0 %vm302_vm1, %v5248_v29  ;;  %4227 = vmatprep.mubr.msk.bf16.mxu1 %vm302_vm1, %v5055_v37 }
  0x60   : > { %4379 = vmatprep.mubr.msk.bf16.mxu0 %vm302_vm1, %v5250_v34 }
  0x66   : > { %4228 = vmatmul.mubr.msk.bf16.gmra.mrb[8].mxu1 %vm302_vm1, %v5059_v39 }
  0x67   : > { %4380 = vmatmul.mubr.msk.bf16.gmra.mrb[24].mxu0 %vm302_vm1, %v5264_v43  ;;  %4231 = vmatprep.mubr.msk.bf16.mxu1 %vm302_vm1, %v5079_v49 }
  0x68   : > { %4383 = vmatprep.mubr.msk.bf16.mxu0 %vm302_vm1, %v5266_v44 }
  0x6e   : > { %4232 = vmatmul.mubr.msk.bf16.gmra.mrb[12].mxu1 %vm302_vm1, %v5083_v51 }
  0x6f   : > { %4384 = vmatmul.mubr.msk.bf16.gmra.mrb[28].mxu0 %vm302_vm1, %v5278_v55  ;;  %4235 = vmatprep.mubr.msk.bf16.mxu1 %vm302_vm1, %v5103_v61 }
  0x70   : > { %4389 = vmatprep.mubr.msk.bf16.mxu0 %vm302_vm1, %v5020_v23 }
  0x76   : > { %4236 = vmatmul.mubr.msk.bf16.gmra.mrb[16].mxu1 %vm302_vm1, %v5292_v0 }
  0x77   : > { %4390 = vmatmul.mubr.msk.bf16.vlgmr.msra.gmra.mrb[0].mxu0 %vm302_vm1, %v5051_v36  ;;  %4239 = vmatprep.mubr.msk.bf16.mxu1 %vm302_vm1, %v5294_v2 }
  0x78   : > { %4393 = vmatprep.mubr.msk.bf16.mxu0 %vm302_vm1, %v5057_v38  ;;  %4422 = vmatpush3.bf16.msra.mxu0 %v2861_v6 }
  0x79   : > { %4916 = vmatprep.subr.msk.bf16.mxu0 %vm351_vm0, %v4011_v8 }
  0x7e   : > { %4240 = vmatmul.mubr.msk.bf16.gmra.mrb[20].mxu1 %vm302_vm1, %v5314_v21 }
  0x7f   : > { %4394 = vmatmul.mubr.msk.bf16.gmra.mrb[4].mxu0 %vm302_vm1, %v5077_v48  ;;  %4243 = vmatprep.mubr.msk.bf16.mxu1 %vm302_vm1, %v5316_v13 }
  0x80   : > { %4397 = vmatprep.mubr.msk.bf16.mxu0 %vm302_vm1, %v5081_v50 }
  0x86   : > { %4244 = vmatmul.mubr.msk.bf16.gmra.mrb[24].mxu1 %vm302_vm1, %v5330_v40 }
  0x87   : > { %4398 = vmatmul.mubr.msk.bf16.gmra.mrb[8].mxu0 %vm302_vm1, %v5101_v60  ;;  %4247 = vmatprep.mubr.msk.bf16.mxu1 %vm302_vm1, %v5332_v41 }
  0x88   : > { %4401 = vmatprep.mubr.msk.bf16.mxu0 %vm302_vm1, %v5105_v62 }
  0x8e   : > { %4248 = vmatmul.mubr.msk.bf16.gmra.mrb[28].mxu1 %vm302_vm1, %v5346_v57 }
  0x8f   : > { %4402 = vmatmul.mubr.msk.bf16.gmra.mrb[12].mxu0 %vm302_vm1, %v5125_v10  ;;  %4253 = vmatprep.mubr.msk.bf16.mxu1 %vm302_vm1, %v970_v58 }
  0x90   : > { %4405 = vmatprep.mubr.msk.bf16.mxu0 %vm302_vm1, %v5129_v12 }
  0x96   : > { %4254 = vmatmul.mubr.msk.bf16.vlgmr.msra.gmra.mrb[0].mxu1 %vm302_vm1, %v5107_v63  ;;  %v3909_v63 = vld [vmem:[%s4994_s26 + $0x180] sm:$0xff] }
  0x97   : > { %4286 = vmatpush3.bf16.msra.mxu1 %v1428_v59  ;;  %4406 = vmatmul.mubr.msk.bf16.gmra.mrb[16].mxu0 %vm302_vm1, %v5158_v30  ;;  %v5377_v6 = vpack.c.bf16 %v3910_v25, %v3909_v63 }
  0x98   : > { %4257 = vmatprep.mubr.msk.bf16.mxu1 %vm302_vm1, %v5127_v11  ;;  %4409 = vmatprep.mubr.msk.bf16.mxu0 %vm302_vm1, %v5162_v32 }
  0x99   : > { %4912 = vmatprep.subr.msk.bf16.mxu1 %vm351_vm0, %v4971_v1  ;;  %v3911_v1 = vld [vmem:[%s4994_s26 + $0x198] sm:$0xff] }
  0x9a   : > { %v2419_v16 = vpack.c.bf16 %v3912_v9, %v3911_v1 }
  0x9e   : > { %4258 = vmatmul.mubr.msk.bf16.gmra.mrb[4].mxu1 %vm302_vm1, %v5131_v15 }
  0x9f   : > { %4410 = vmatmul.mubr.msk.bf16.gmra.mrb[20].mxu0 %vm302_vm1, %v5182_v46  ;;  %4261 = vmatprep.mubr.msk.bf16.mxu1 %vm302_vm1, %v5160_v31 }
  0xa0   : > { %4413 = vmatprep.mubr.msk.bf16.mxu0 %vm302_vm1, %v5186_v52 }
  0xa6   : > { %4262 = vmatmul.mubr.msk.bf16.gmra.mrb[8].mxu1 %vm302_vm1, %v5164_v33 }
  0xa7   : > { %4414 = vmatmul.mubr.msk.bf16.gmra.mrb[24].mxu0 %vm302_vm1, %v5206_v4  ;;  %4265 = vmatprep.mubr.msk.bf16.mxu1 %vm302_vm1, %v5184_v47 }
  0xa8   : > { %4417 = vmatprep.mubr.msk.bf16.mxu0 %vm302_vm1, %v5377_v6 }
  0xae   : > { %4266 = vmatmul.mubr.msk.bf16.gmra.mrb[12].mxu1 %vm302_vm1, %v5188_v53 }
  0xaf   : > { %4418 = vmatmul.mubr.msk.bf16.gmra.mrb[28].mxu0 %vm302_vm1, %v2419_v16  ;;  %4269 = vmatprep.mubr.msk.bf16.mxu1 %vm302_vm1, %v5208_v5 }
  0xb0   : > { %4423 = vmatprep.mubr.msk.bf16.mxu0 %vm302_vm1, %v5011_v19 }
  0xb6   : > { %4270 = vmatmul.mubr.msk.bf16.gmra.mrb[16].mxu1 %vm302_vm1, %v5210_v7 }
  0xb7   : > { %4424 = vmatmul.mubr.msk.bf16.vlgmr.msra.gmra.mrb[0].mxu0 %vm302_vm1, %v5022_v24  ;;  %4273 = vmatprep.mubr.msk.bf16.mxu1 %vm302_vm1, %v5223_v20  ;;  %v3961_v24 = vld [vmem:[%s4994_s26 + $0x1a1] sm:$0xff] }
  0xb8   : > { %4427 = vmatprep.mubr.msk.bf16.mxu0 %vm302_vm1, %v5055_v37  ;;  %4456 = vmatpush3.bf16.msra.mxu0 %v3219_v17  ;;  %v4009_v37 = vld [vmem:[%s4994_s26 + $0x19a] sm:$0xff] }
  0xbe   : > { %4274 = vmatmul.mubr.msk.bf16.gmra.mrb[20].mxu1 %vm302_vm1, %v5227_v22 }
  0xbf   : > { %4428 = vmatmul.mubr.msk.bf16.gmra.mrb[4].mxu0 %vm302_vm1, %v5059_v39  ;;  %4277 = vmatprep.mubr.msk.bf16.mxu1 %vm302_vm1, %v5248_v29 }
  0xc0   : > { %4431 = vmatprep.mubr.msk.bf16.mxu0 %vm302_vm1, %v5079_v49 }
  0xc6   : > { %4278 = vmatmul.mubr.msk.bf16.gmra.mrb[24].mxu1 %vm302_vm1, %v5250_v34 }
  0xc7   : > { %4432 = vmatmul.mubr.msk.bf16.gmra.mrb[8].mxu0 %vm302_vm1, %v5083_v51  ;;  %4281 = vmatprep.mubr.msk.bf16.mxu1 %vm302_vm1, %v5264_v43 }
  0xc8   : > { %4435 = vmatprep.mubr.msk.bf16.mxu0 %vm302_vm1, %v5103_v61 }
  0xce   : > { %4282 = vmatmul.mubr.msk.bf16.gmra.mrb[28].mxu1 %vm302_vm1, %v5266_v44 }
  0xcf   : > { %4436 = vmatmul.mubr.msk.bf16.gmra.mrb[12].mxu0 %vm302_vm1, %v5292_v0  ;;  %4287 = vmatprep.mubr.msk.bf16.mxu1 %vm302_vm1, %v5004_v14  ;;  %v3959_v14 = vld [vmem:[%s4994_s26 + $0x189] sm:$0xff] }
  0xd0   : > { %4439 = vmatprep.mubr.msk.bf16.mxu0 %vm302_vm1, %v5294_v2 }
  0xd6   : > { %4288 = vmatmul.mubr.msk.bf16.vlgmr.msra.gmra.mrb[0].mxu1 %vm302_vm1, %v5020_v23  ;;  %v3960_v23 = vld [vmem:[%s4994_s26 + $0x199] sm:$0xff] }
  0xd7   : > { %4490 = vmatpush3.bf16.msra.mxu1 %v4980_v3  ;;  %4440 = vmatmul.mubr.msk.bf16.gmra.mrb[16].mxu0 %vm302_vm1, %v5314_v21  ;;  %v3958_v3 = vld [vmem:[%s4994_s26 + $0x181] sm:$0xff] }
  0xd8   : > { %4291 = vmatprep.mubr.msk.bf16.mxu1 %vm302_vm1, %v5051_v36  ;;  %4443 = vmatprep.mubr.msk.bf16.mxu0 %vm302_vm1, %v5316_v13  ;;  %v2776_v19 = vpack.c.bf16 %v3959_v14, %v3958_v3  ;;  %v2777_v36 = vpack.c.bf16 %v3961_v24, %v3960_v23 }
  0xde   : > { %4292 = vmatmul.mubr.msk.bf16.gmra.mrb[4].mxu1 %vm302_vm1, %v5057_v38  ;;  %v4010_v38 = vld [vmem:[%s4994_s26 + $0x1a2] sm:$0xff] }
  0xdf   : > { %4444 = vmatmul.mubr.msk.bf16.gmra.mrb[20].mxu0 %vm302_vm1, %v5330_v40  ;;  %4295 = vmatprep.mubr.msk.bf16.mxu1 %vm302_vm1, %v5077_v48  ;;  %v3135_v39 = vpack.c.bf16 %v4010_v38, %v4009_v37 }
  0xe0   : > { %4447 = vmatprep.mubr.msk.bf16.mxu0 %vm302_vm1, %v5332_v41 }
  0xe6   : > { %4296 = vmatmul.mubr.msk.bf16.gmra.mrb[8].mxu1 %vm302_vm1, %v5081_v50 }
  0xe7   : > { %4448 = vmatmul.mubr.msk.bf16.gmra.mrb[24].mxu0 %vm302_vm1, %v5346_v57  ;;  %4299 = vmatprep.mubr.msk.bf16.mxu1 %vm302_vm1, %v5101_v60 }
  0xe8   : > { %4451 = vmatprep.mubr.msk.bf16.mxu0 %vm302_vm1, %v2776_v19 }
  0xee   : > { %4300 = vmatmul.mubr.msk.bf16.gmra.mrb[12].mxu1 %vm302_vm1, %v5105_v62 }
  0xef   : > { %4452 = vmatmul.mubr.msk.bf16.gmra.mrb[28].mxu0 %vm302_vm1, %v2777_v36  ;;  %4303 = vmatprep.mubr.msk.bf16.mxu1 %vm302_vm1, %v5125_v10 }
  0xf0   : > { %4457 = vmatprep.mubr.msk.bf16.mxu0 %vm302_vm1, %v5127_v11 }
  0xf6   : > { %4304 = vmatmul.mubr.msk.bf16.gmra.mrb[16].mxu1 %vm302_vm1, %v5129_v12 }
  0xf7   : > { %4458 = vmatmul.mubr.msk.bf16.vlgmr.msra.gmra.mrb[0].mxu0 %vm302_vm1, %v5131_v15  ;;  %4307 = vmatprep.mubr.msk.bf16.mxu1 %vm302_vm1, %v5158_v30 }
  0xf8   : > { %4461 = vmatprep.mubr.msk.bf16.mxu0 %vm302_vm1, %v5160_v31 }
  0xfe   : > { %4308 = vmatmul.mubr.msk.bf16.gmra.mrb[20].mxu1 %vm302_vm1, %v5162_v32 }
  0xff   : > { %4462 = vmatmul.mubr.msk.bf16.gmra.mrb[4].mxu0 %vm302_vm1, %v5164_v33  ;;  %4311 = vmatprep.mubr.msk.bf16.mxu1 %vm302_vm1, %v5182_v46 }
 0x100   : > { %4465 = vmatprep.mubr.msk.bf16.mxu0 %vm302_vm1, %v5184_v47 }
 0x106   : > { %4312 = vmatmul.mubr.msk.bf16.gmra.mrb[24].mxu1 %vm302_vm1, %v5186_v52 }
 0x107   : > { %4466 = vmatmul.mubr.msk.bf16.gmra.mrb[8].mxu0 %vm302_vm1, %v5188_v53  ;;  %4315 = vmatprep.mubr.msk.bf16.mxu1 %vm302_vm1, %v5206_v4 }
 0x108   : > { %4469 = vmatprep.mubr.msk.bf16.mxu0 %vm302_vm1, %v5208_v5 }
 0x10e   : > { %4316 = vmatmul.mubr.msk.bf16.gmra.mrb[28].mxu1 %vm302_vm1, %v5377_v6 }
 0x10f   : > { %4470 = vmatmul.mubr.msk.bf16.gmra.mrb[12].mxu0 %vm302_vm1, %v5210_v7  ;;  %4337 = vmatprep.mubr.msk.bf16.mxu1 %vm302_vm1, %v5292_v0 }
 0x110   : > { %4473 = vmatprep.mubr.msk.bf16.mxu0 %vm302_vm1, %v5223_v20 }
 0x116   : > { %4338 = vmatmul.mubr.msk.bf16.vlgmr.msra.gmra.mrb[16].mxu1 %vm302_vm1, %v5294_v2 }
 0x117   : > { %4474 = vmatmul.mubr.msk.bf16.gmra.mrb[16].mxu0 %vm302_vm1, %v5227_v22  ;;  %4341 = vmatprep.mubr.msk.bf16.mxu1 %vm302_vm1, %v5314_v21 }
 0x118   : > { %4477 = vmatprep.mubr.msk.bf16.mxu0 %vm302_vm1, %v5248_v29 }
 0x11e   : > { %4342 = vmatmul.mubr.msk.bf16.gmra.mrb[20].mxu1 %vm302_vm1, %v5316_v13 }
 0x11f   : > { %4478 = vmatmul.mubr.msk.bf16.gmra.mrb[20].mxu0 %vm302_vm1, %v5250_v34  ;;  %4345 = vmatprep.mubr.msk.bf16.mxu1 %vm302_vm1, %v5330_v40 }
 0x120   : > { %4481 = vmatprep.mubr.msk.bf16.mxu0 %vm302_vm1, %v5264_v43 }
 0x126   : > { %4346 = vmatmul.mubr.msk.bf16.gmra.mrb[24].mxu1 %vm302_vm1, %v5332_v41 }
 0x127   : > { %4482 = vmatmul.mubr.msk.bf16.gmra.mrb[24].mxu0 %vm302_vm1, %v5266_v44  ;;  %4349 = vmatprep.mubr.msk.bf16.mxu1 %vm302_vm1, %v5346_v57 }
 0x128   : > { %4485 = vmatprep.mubr.msk.bf16.mxu0 %vm302_vm1, %v5278_v55 }
 0x12e   : > { %4350 = vmatmul.mubr.msk.bf16.gmra.mrb[28].mxu1 %vm302_vm1, %v2776_v19 }
 0x12f   : > { %4486 = vmatmul.mubr.msk.bf16.gmra.mrb[28].mxu0 %vm302_vm1, %v3135_v39 }
 0x1a9   : > { %v4289_v48 = vpop.f32.mrb[0].mxu1 }
 0x1aa   : > { %v1464_v49 = vpop.f32.mrb[1].mxu1 }
 0x1ab   : > { %v4290_v50 = vpop.f32.mrb[2].mxu1 }
 0x1ac   : > { %v1467_v51 = vpop.f32.mrb[3].mxu1 }
 0x1b1   : > { %v4293_v60 = vpop.f32.mrb[4].mxu1 }
 0x1b2   : > { %v1480_v61 = vpop.f32.mrb[5].mxu1 }
 0x1b3   : > { %v4294_v62 = vpop.f32.mrb[6].mxu1 }
 0x1b4   : > { %v1483_v10 = vpop.f32.mrb[7].mxu1 }
 0x1b9   : > { %v4297_v11 = vpop.f32.mrb[8].mxu1 }
 0x1ba   : > { %v1496_v12 = vpop.f32.mrb[9].mxu1 }
 0x1bb   : > { %v4298_v15 = vpop.f32.mrb[10].mxu1 }
 0x1bc   : > { %v5525_v30 = vpop.f32.mrb[11].mxu1 }
 0x1c1   : > { %v5527_v31 = vpop.f32.mrb[12].mxu1 }
 0x1c2   : > { %v5529_v32 = vpop.f32.mrb[13].mxu1 }
 0x1c3   : > { %v5531_v33 = vpop.f32.mrb[14].mxu1 }
 0x1c4   : > { %v5533_v46 = vpop.f32.mrb[15].mxu1 }
 0x1ca   : > { %v4459_v47 = vpop.f32.mrb[0].mxu0 }
 0x1cb   : > { %v4496_v52 = vadd.f32 %v4459_v47, %v4289_v48  ;;  %v3255_v53 = vpop.f32.mrb[1].mxu0 }
 0x1cc   : > { %v4502_v4 = vadd.f32 %v3255_v53, %v1464_v49  ;;  %v4460_v5 = vpop.f32.mrb[2].mxu0 }
 0x1cd   : > { %3416 = vst [vmem:[%s5538_s16 + $0x10] sm:$0xff] %v4496_v52  ;;  %v4508_v7 = vadd.f32 %v4460_v5, %v4290_v50  ;;  %v3258_v20 = vpop.f32.mrb[3].mxu0  ;;  %v3517_v44 = vmul.f32 %v4496_v52, %v4496_v52 }
 0x1ce   : > { %3414 = vst [vmem:[%s5538_s16] sm:$0xff] %v4502_v4  ;;  %v4514_v22 = vadd.f32 %v3258_v20, %v1467_v51  ;;  %v3515_v29 = vmul.f32 %v4502_v4, %v4502_v4 }
 0x1cf   : > { %3417 = vst [vmem:[%s5538_s16 + $0x18] sm:$0xff] %v4508_v7  ;;  %v3518_v21 = vmul.f32 %v4508_v7, %v4508_v7 }
 0x1d0   : > { %3415 = vst [vmem:[%s5538_s16 + $0x8] sm:$0xff] %v4514_v22  ;;  %v3478_v34 = vadd.f32 %v4514_v22, %v4502_v4  ;;  %v3516_v43 = vmul.f32 %v4514_v22, %v4514_v22 }
 0x1d2   : > { %v3479_v55 = vadd.f32 %v4496_v52, %v3478_v34  ;;  %v3547_v0 = vadd.f32 %v3516_v43, %v3515_v29  ;;  %v4463_v2 = vpop.f32.mrb[4].mxu0 }
 0x1d3   : > { %v4520_v8 = vadd.f32 %v4463_v2, %v4293_v60  ;;  %v3271_v18 = vpop.f32.mrb[5].mxu0 }
 0x1d4   : > { %v3548_v13 = vadd.f32 %v3547_v0, %v3517_v44  ;;  %v4526_v27 = vadd.f32 %v3271_v18, %v1480_v61  ;;  %v3480_v26 = vadd.f32 %v4508_v7, %v3479_v55  ;;  %v4464_v28 = vpop.f32.mrb[6].mxu0 }
 0x1d5   : > { %3420 = vst [vmem:[%s5538_s16 + $0x30] sm:$0xff] %v4520_v8  ;;  %v4532_v35 = vadd.f32 %v4464_v28, %v4294_v62  ;;  %v3274_v40 = vpop.f32.mrb[7].mxu0  ;;  %v3521_v59 = vmul.f32 %v4520_v8, %v4520_v8 }
 0x1d6   : > { %3418 = vst [vmem:[%s5538_s16 + $0x20] sm:$0xff] %v4526_v27  ;;  %v3481_v41 = vadd.f32 %v4526_v27, %v3480_v26  ;;  %v3519_v42 = vmul.f32 %v4526_v27, %v4526_v27  ;;  %v3549_v45 = vadd.f32 %v3548_v13, %v3518_v21  ;;  %v4538_v54 = vadd.f32 %v3274_v40, %v1483_v10 }
 0x1d7   : > { %3421 = vst [vmem:[%s5538_s16 + $0x38] sm:$0xff] %v4532_v35  ;;  %v3522_v16 = vmul.f32 %v4532_v35, %v4532_v35 }
 0x1d8   : > { %v3550_v56 = vadd.f32 %v3549_v45, %v3519_v42  ;;  %3419 = vst [vmem:[%s5538_s16 + $0x28] sm:$0xff] %v4538_v54  ;;  %v3482_v57 = vadd.f32 %v4538_v54, %v3481_v41  ;;  %v3520_v58 = vmul.f32 %v4538_v54, %v4538_v54 }
 0x1da   : > { %v3483_v63 = vadd.f32 %v4520_v8, %v3482_v57  ;;  %v3551_v25 = vadd.f32 %v3550_v56, %v3520_v58  ;;  %v4467_v6 = vpop.f32.mrb[8].mxu0 }
 0x1db   : > { %v4544_v1 = vadd.f32 %v4467_v6, %v4297_v11  ;;  %v3287_v9 = vpop.f32.mrb[9].mxu0 }
 0x1dc   : > { %v3552_v17 = vadd.f32 %v3551_v25, %v3521_v59  ;;  %v4550_v3 = vadd.f32 %v3287_v9, %v1496_v12  ;;  %v3484_v14 = vadd.f32 %v4532_v35, %v3483_v63  ;;  %v4468_v19 = vpop.f32.mrb[10].mxu0 }
 0x1dd   : > { %3424 = vst [vmem:[%s5538_s16 + $0x50] sm:$0xff] %v4544_v1  ;;  %v4556_v23 = vadd.f32 %v4468_v19, %v4298_v15  ;;  %v3290_v24 = vpop.f32.mrb[11].mxu0  ;;  %v3525_v51 = vmul.f32 %v4544_v1, %v4544_v1 }
 0x1de   : > { %3422 = vst [vmem:[%s5538_s16 + $0x40] sm:$0xff] %v4550_v3  ;;  %v3485_v36 = vadd.f32 %v4550_v3, %v3484_v14  ;;  %v3523_v37 = vmul.f32 %v4550_v3, %v4550_v3  ;;  %v3553_v38 = vadd.f32 %v3552_v17, %v3522_v16  ;;  %v4562_v39 = vadd.f32 %v3290_v24, %v5525_v30 }
 0x1df   : > { %3425 = vst [vmem:[%s5538_s16 + $0x58] sm:$0xff] %v4556_v23  ;;  %v3526_v12 = vmul.f32 %v4556_v23, %v4556_v23 }
 0x1e0   : > { %v3554_v48 = vadd.f32 %v3553_v38, %v3523_v37  ;;  %3423 = vst [vmem:[%s5538_s16 + $0x48] sm:$0xff] %v4562_v39  ;;  %v3486_v49 = vadd.f32 %v4562_v39, %v3485_v36  ;;  %v3524_v50 = vmul.f32 %v4562_v39, %v4562_v39 }
 0x1e2   : > { %v3487_v60 = vadd.f32 %v4544_v1, %v3486_v49  ;;  %v3555_v61 = vadd.f32 %v3554_v48, %v3524_v50  ;;  %v4471_v62 = vpop.f32.mrb[12].mxu0 }
 0x1e3   : > { %v4568_v10 = vadd.f32 %v4471_v62, %v5527_v31  ;;  %v3303_v11 = vpop.f32.mrb[13].mxu0 }
 0x1e4   : > { %v3556_v15 = vadd.f32 %v3555_v61, %v3525_v51  ;;  %v4574_v30 = vadd.f32 %v3303_v11, %v5529_v32  ;;  %v3488_v47 = vadd.f32 %v4556_v23, %v3487_v60  ;;  %v4472_v52 = vpop.f32.mrb[14].mxu0 }
 0x1e5   : > { %3428 = vst [vmem:[%s5538_s16 + $0x70] sm:$0xff] %v4568_v10  ;;  %v4580_v53 = vadd.f32 %v4472_v52, %v5531_v33  ;;  %v3306_v4 = vpop.f32.mrb[15].mxu0  ;;  %v3529_v32 = vmul.f32 %v4568_v10, %v4568_v10 }
 0x1e6   : > { %3426 = vst [vmem:[%s5538_s16 + $0x60] sm:$0xff] %v4574_v30  ;;  %v3489_v5 = vadd.f32 %v4574_v30, %v3488_v47  ;;  %v3527_v7 = vmul.f32 %v4574_v30, %v4574_v30  ;;  %v3557_v20 = vadd.f32 %v3556_v15, %v3526_v12  ;;  %v4586_v22 = vadd.f32 %v3306_v4, %v5533_v46 }
 0x1e7   : > { %3429 = vst [vmem:[%s5538_s16 + $0x78] sm:$0xff] %v4580_v53  ;;  %v3530_v2 = vmul.f32 %v4580_v53, %v4580_v53 }
 0x1e8   : > { %v3558_v31 = vadd.f32 %v3557_v20, %v3527_v7  ;;  %3427 = vst [vmem:[%s5538_s16 + $0x68] sm:$0xff] %v4586_v22  ;;  %v3490_v29 = vadd.f32 %v4586_v22, %v3489_v5  ;;  %v3528_v34 = vmul.f32 %v4586_v22, %v4586_v22 }
 0x1e9   : > { %v4339_v43 = vpop.f32.mrb[16].mxu1 }
 0x1ea   : > { %v3491_v44 = vadd.f32 %v4568_v10, %v3490_v29  ;;  %v3559_v55 = vadd.f32 %v3558_v31, %v3528_v34  ;;  %v4475_v0 = vpop.f32.mrb[16].mxu0  ;;  %v1886_v33 = vpop.f32.mrb[17].mxu1 }
 0x1eb   : > { %v3319_v8 = vpop.f32.mrb[17].mxu0  ;;  %v4340_v18 = vpop.f32.mrb[18].mxu1  ;;  %v4592_v46 = vadd.f32 %v4475_v0, %v4339_v43 }
 0x1ec   : > { %v3560_v21 = vadd.f32 %v3559_v55, %v3529_v32  ;;  %v3492_v13 = vadd.f32 %v4580_v53, %v3491_v44  ;;  %v4476_v27 = vpop.f32.mrb[18].mxu0  ;;  %v1889_v26 = vpop.f32.mrb[19].mxu1  ;;  %v4598_v28 = vadd.f32 %v3319_v8, %v1886_v33 }
 0x1ed   : > { %v3322_v35 = vpop.f32.mrb[19].mxu0  ;;  %3432 = vst [vmem:[%s5538_s16 + $0x90] sm:$0xff] %v4592_v46  ;;  %v4604_v41 = vadd.f32 %v4476_v27, %v4340_v18  ;;  %v3533_v6 = vmul.f32 %v4592_v46, %v4592_v46 }
 0x1ee   : > { %v3561_v40 = vadd.f32 %v3560_v21, %v3530_v2  ;;  %3430 = vst [vmem:[%s5538_s16 + $0x80] sm:$0xff] %v4598_v28  ;;  %v3493_v42 = vadd.f32 %v4598_v28, %v3492_v13  ;;  %v3531_v45 = vmul.f32 %v4598_v28, %v4598_v28  ;;  %v4610_v54 = vadd.f32 %v3322_v35, %v1889_v26 }
 0x1ef   : > { %3433 = vst [vmem:[%s5538_s16 + $0x98] sm:$0xff] %v4604_v41  ;;  %v3534_v3 = vmul.f32 %v4604_v41, %v4604_v41 }
 0x1f0   : > { %v3562_v56 = vadd.f32 %v3561_v40, %v3531_v45  ;;  %3431 = vst [vmem:[%s5538_s16 + $0x88] sm:$0xff] %v4610_v54  ;;  %v3494_v57 = vadd.f32 %v4610_v54, %v3493_v42  ;;  %v3532_v58 = vmul.f32 %v4610_v54, %v4610_v54 }
 0x1f1   : > { %v4343_v59 = vpop.f32.mrb[20].mxu1 }
 0x1f2   : > { %v4479_v63 = vpop.f32.mrb[20].mxu0  ;;  %v1902_v25 = vpop.f32.mrb[21].mxu1  ;;  %v3495_v1 = vadd.f32 %v4592_v46, %v3494_v57  ;;  %v3563_v9 = vadd.f32 %v3562_v56, %v3532_v58 }
 0x1f3   : > { %v3335_v16 = vpop.f32.mrb[21].mxu0  ;;  %v4344_v17 = vpop.f32.mrb[22].mxu1  ;;  %v4616_v14 = vadd.f32 %v4479_v63, %v4343_v59 }
 0x1f4   : > { %v4480_v19 = vpop.f32.mrb[22].mxu0  ;;  %v1905_v23 = vpop.f32.mrb[23].mxu1  ;;  %v3564_v24 = vadd.f32 %v3563_v9, %v3533_v6  ;;  %v4622_v36 = vadd.f32 %v3335_v16, %v1902_v25  ;;  %v3496_v37 = vadd.f32 %v4604_v41, %v3495_v1 }
 0x1f5   : > { %v3338_v38 = vpop.f32.mrb[23].mxu0  ;;  %3436 = vst [vmem:[%s5538_s16 + $0xb0] sm:$0xff] %v4616_v14  ;;  %v4628_v39 = vadd.f32 %v4480_v19, %v4344_v17  ;;  %v3537_v15 = vmul.f32 %v4616_v14, %v4616_v14 }
 0x1f6   : > { %3434 = vst [vmem:[%s5538_s16 + $0xa0] sm:$0xff] %v4622_v36  ;;  %v3497_v48 = vadd.f32 %v4622_v36, %v3496_v37  ;;  %v3535_v49 = vmul.f32 %v4622_v36, %v4622_v36  ;;  %v3565_v50 = vadd.f32 %v3564_v24, %v3534_v3  ;;  %v4634_v51 = vadd.f32 %v3338_v38, %v1905_v23 }
 0x1f7   : > { %3437 = vst [vmem:[%s5538_s16 + $0xb8] sm:$0xff] %v4628_v39  ;;  %v3538_v4 = vmul.f32 %v4628_v39, %v4628_v39 }
 0x1f8   : > { %v3566_v60 = vadd.f32 %v3565_v50, %v3535_v49  ;;  %3435 = vst [vmem:[%s5538_s16 + $0xa8] sm:$0xff] %v4634_v51  ;;  %v3498_v61 = vadd.f32 %v4634_v51, %v3497_v48  ;;  %v3536_v62 = vmul.f32 %v4634_v51, %v4634_v51 }
 0x1f9   : > { %v4347_v10 = vpop.f32.mrb[24].mxu1 }
 0x1fa   : > { %v4483_v11 = vpop.f32.mrb[24].mxu0  ;;  %v1918_v12 = vpop.f32.mrb[25].mxu1  ;;  %v3499_v30 = vadd.f32 %v4616_v14, %v3498_v61  ;;  %v3567_v47 = vadd.f32 %v3566_v60, %v3536_v62 }
 0x1fb   : > { %v3351_v52 = vpop.f32.mrb[25].mxu0  ;;  %v4348_v53 = vpop.f32.mrb[26].mxu1  ;;  %v4640_v5 = vadd.f32 %v4483_v11, %v4347_v10 }
 0x1fc   : > { %v4484_v7 = vpop.f32.mrb[26].mxu0  ;;  %v1921_v20 = vpop.f32.mrb[27].mxu1  ;;  %v3568_v22 = vadd.f32 %v3567_v47, %v3537_v15  ;;  %v4646_v31 = vadd.f32 %v3351_v52, %v1918_v12  ;;  %v3500_v29 = vadd.f32 %v4628_v39, %v3499_v30 }
 0x1fd   : > { %v3354_v34 = vpop.f32.mrb[27].mxu0  ;;  %3440 = vst [vmem:[%s5538_s16 + $0xd0] sm:$0xff] %v4640_v5  ;;  %v4652_v43 = vadd.f32 %v4484_v7, %v4348_v53  ;;  %v3541_v13 = vmul.f32 %v4640_v5, %v4640_v5 }
 0x1fe   : > { %3438 = vst [vmem:[%s5538_s16 + $0xc0] sm:$0xff] %v4646_v31  ;;  %v3501_v32 = vadd.f32 %v4646_v31, %v3500_v29  ;;  %v3539_v44 = vmul.f32 %v4646_v31, %v4646_v31  ;;  %v3569_v55 = vadd.f32 %v3568_v22, %v3538_v4  ;;  %v4658_v0 = vadd.f32 %v3354_v34, %v1921_v20 }
 0x1ff   : > { %3441 = vst [vmem:[%s5538_s16 + $0xd8] sm:$0xff] %v4652_v43  ;;  %v3542_v40 = vmul.f32 %v4652_v43, %v4652_v43 }
 0x200   : > { %v3570_v33 = vadd.f32 %v3569_v55, %v3539_v44  ;;  %3439 = vst [vmem:[%s5538_s16 + $0xc8] sm:$0xff] %v4658_v0  ;;  %v3502_v2 = vadd.f32 %v4658_v0, %v3501_v32  ;;  %v3540_v8 = vmul.f32 %v4658_v0, %v4658_v0 }
 0x201   : > { %v4351_v18 = vpop.f32.mrb[28].mxu1 }
 0x202   : > { %v4487_v21 = vpop.f32.mrb[28].mxu0  ;;  %v1934_v46 = vpop.f32.mrb[29].mxu1  ;;  %v3503_v27 = vadd.f32 %v4640_v5, %v3502_v2  ;;  %v3571_v26 = vadd.f32 %v3570_v33, %v3540_v8 }
 0x203   : > { %v3367_v28 = vpop.f32.mrb[29].mxu0  ;;  %v4352_v35 = vpop.f32.mrb[30].mxu1  ;;  %v4664_v41 = vadd.f32 %v4487_v21, %v4351_v18 }
 0x204   : > { %v4488_v42 = vpop.f32.mrb[30].mxu0  ;;  %v1937_v45 = vpop.f32.mrb[31].mxu1  ;;  %v3572_v54 = vadd.f32 %v3571_v26, %v3541_v13  ;;  %v4670_v56 = vadd.f32 %v3367_v28, %v1934_v46  ;;  %v3504_v57 = vadd.f32 %v4652_v43, %v3503_v27 }
 0x205   : > { %v3370_v58 = vpop.f32.mrb[31].mxu0  ;;  %3444 = vst [vmem:[%s5538_s16 + $0xf0] sm:$0xff] %v4664_v41  ;;  %v4676_v59 = vadd.f32 %v4488_v42, %v4352_v35  ;;  %v3545_v3 = vmul.f32 %v4664_v41, %v4664_v41 }
 0x206   : > { %3442 = vst [vmem:[%s5538_s16 + $0xe0] sm:$0xff] %v4670_v56  ;;  %v3505_v63 = vadd.f32 %v4670_v56, %v3504_v57  ;;  %v3543_v25 = vmul.f32 %v4670_v56, %v4670_v56  ;;  %v3573_v6 = vadd.f32 %v3572_v54, %v3542_v40  ;;  %v4682_v1 = vadd.f32 %v3370_v58, %v1937_v45 }
 0x207   : > { %3445 = vst [vmem:[%s5538_s16 + $0xf8] sm:$0xff] %v4676_v59  ;;  %v3546_v23 = vmul.f32 %v4676_v59, %v4676_v59 }
 0x208   : > { %v3574_v9 = vadd.f32 %v3573_v6, %v3543_v25  ;;  %3443 = vst [vmem:[%s5538_s16 + $0xe8] sm:$0xff] %v4682_v1  ;;  %v3506_v16 = vadd.f32 %v4682_v1, %v3505_v63  ;;  %v3544_v17 = vmul.f32 %v4682_v1, %v4682_v1 }
 0x20a   : > { %v3507_v14 = vadd.f32 %v4664_v41, %v3506_v16  ;;  %v3575_v19 = vadd.f32 %v3574_v9, %v3544_v17 }
 0x20c   : > { %v3508_v24 = vadd.f32 %v4676_v59, %v3507_v14  ;;  %v3576_v36 = vadd.f32 %v3575_v19, %v3545_v3 }
 0x20e   : > { %v3509_v37 = vrot.slane %v3508_v24, 4  ;;  %v3577_v38 = vadd.f32 %v3576_v36, %v3546_v23 }
 0x210   : > { %v3510_v39 = vadd.f32 %v3509_v37, %v3508_v24  ;;  %v3578_v48 = vrot.slane %v3577_v38, 4 }
 0x212   : > { %v3511_v49 = vrot.slane %v3510_v39, 2  ;;  %v3579_v50 = vadd.f32 %v3578_v48, %v3577_v38 }
 0x214   : > { %v3512_v51 = vadd.f32 %v3511_v49, %v3510_v39  ;;  %v3580_v60 = vrot.slane %v3579_v50, 2 }
 0x216   : > { %v3513_v61 = vrot.slane %v3512_v51, 1  ;;  %v3581_v62 = vadd.f32 %v3580_v60, %v3579_v50 }
 0x218   : > { %v3582_v10 = vrot.slane %v3581_v62, 1  ;;  %v3514_v11 = vadd.f32 %v3513_v61, %v3512_v51 }
 0x21a   : > { %v3583_v12 = vadd.f32 %v3582_v10, %v3581_v62 }
 0x21c   : > { %v3585_v15 = vsel %vm3584_vm2, %v3514_v11, %v3583_v12 }
 0x21d   : > { %v3586_v30 = vsel %vm351_vm0, %v3585_v15, 0.0 }
 0x21e   : > { %3587 = vst [vmem:[%s187_s20] sm:$0xff] %v3586_v30 }
 0x21f PF: > { %s14_s12 = sadd.s32 1, %s4933_s12  }
 0x220   : > { %p11_p6 = scmp.ge.s32.totalorder %s14_s12, 4  }
 0x222   :  { %13 = sbr.rel (!%p11_p6) target bundleno = 1 (0x1), region = 80 }

</bundles_post_ra>
